<compile_context>
chip_gen: v6e
topology: v6e:2x2x1
jax: 0.10.0
libtpu: 0.0.40
codegen_flags: <defaults>
</compile_context>

<pallas_src>
import functools
import math

import jax
import jax.numpy as jnp
from jax.experimental import pallas as pl
from jax.experimental.pallas import tpu as pltpu  # noqa: F401  (kept for conventional availability)


# ------------------------------ fused kernel -------------------------------

def _decoder_layer_kernel(
    tgt_ref, mem_ref, qpos_ref, pos_ref,
    s_qw_ref, s_qb_ref, s_ow_ref, s_ob_ref,
    c_qw_ref, c_qb_ref, c_ow_ref, c_ob_ref,
    kw_ref, kb_ref, vw_ref, vb_ref,
    w1_ref, b1_ref, w2_ref, b2_ref,
    g1_ref, bb1_ref, g2_ref, bb2_ref, g3_ref, bb3_ref,
    o_ref,
    *, L, S, N, H, eps):
    """Whole decoder layer on VMEM-resident data.

    Activations: batch-major 2-D slabs, rows ordered (batch, position).
      tgt: (N*L, E), memory: (N*S, E), qpos: (N*L, E), pos: (N*S, E)
    Weights (already transposed / reshaped host-side):
      per-block Q proj:  qw (E, E), qb (1, E)
      per-block out proj: ow (E, E), ob (1, E)
      fused K proj of both blocks: kw (E, 2E) = [Wk_self^T | Wk_cross^T], kb (1, 2E)
      fused V proj of both blocks: vw (E, 2E), vb (1, 2E)
      FFN: w1 (E, F), b1 (1, F), w2 (F, E), b2 (1, E)
      LayerNorm gamma/beta as (1, E).
    """
    E = o_ref.shape[-1]
    Dh = E // H
    scale = 1.0 / math.sqrt(Dh)
    f32 = jnp.float32

    tgt = tgt_ref[...].astype(f32)                  # (N*L, E)
    mem = mem_ref[...].astype(f32)                  # (N*S, E)  value for both attn blocks
    qpos = qpos_ref[...].astype(f32)                # (N*L, E)
    k_base = mem + pos_ref[...].astype(f32)         # memory + pos (key for both attn blocks)

    # Fused K / V projections for BOTH attention blocks (lane-dense E->2E matmuls).
    k_all = jnp.dot(k_base, kw_ref[...], preferred_element_type=f32) + kb_ref[...]  # (N*S, 2E)
    v_all = jnp.dot(mem, vw_ref[...], preferred_element_type=f32) + vb_ref[...]     # (N*S, 2E)

    def layernorm(x, g_ref, b_ref):
        mean = jnp.mean(x, axis=-1, keepdims=True)
        xc = x - mean
        var = jnp.mean(xc * xc, axis=-1, keepdims=True)
        return xc * jax.lax.rsqrt(var + eps) * g_ref[...] + b_ref[...]

    def mha(q_in, qw_ref, qb_ref, ow_ref, ob_ref, koff):
        qp = (jnp.dot(q_in, qw_ref[...], preferred_element_type=f32) + qb_ref[...]) * scale
        kp = k_all[:, koff:koff + E]                # (N*S, E) static slice
        vp = v_all[:, koff:koff + E]
        outw = ow_ref[...]                          # (E, E)

        acc = jnp.zeros((N * L, E), f32)
        for h in range(H):                          # static unroll, H small
            c0, c1 = h * Dh, (h + 1) * Dh
            qh = qp[:, c0:c1].reshape(N, L, Dh)
            kh = kp[:, c0:c1].reshape(N, S, Dh)
            vh = vp[:, c0:c1].reshape(N, S, Dh)
            s = jnp.einsum("nld,nsd->nls", qh, kh, preferred_element_type=f32)
            s = s - jnp.max(s, axis=-1, keepdims=True)
            p = jnp.exp(s)
            p = p * pl.reciprocal(jnp.sum(p, axis=-1, keepdims=True), approx=False)
            oh = jnp.einsum("nls,nsd->nld", p, vh, preferred_element_type=f32)
            # Accumulate this head's contribution to the output projection;
            # avoids any concat / head-merge lane shuffle.
            acc = acc + jnp.dot(oh.reshape(N * L, Dh), outw[c0:c1, :],
                                preferred_element_type=f32)
        return acc + ob_ref[...]

    # block 1: "self" attention (the reference module feeds memory as K/V here too)
    x = layernorm(tgt + mha(tgt + qpos, s_qw_ref, s_qb_ref, s_ow_ref, s_ob_ref, 0),
                  g1_ref, bb1_ref)
    # block 2: cross attention
    x = layernorm(x + mha(x + qpos, c_qw_ref, c_qb_ref, c_ow_ref, c_ob_ref, E),
                  g2_ref, bb2_ref)
    # block 3: feed-forward (relu)
    hidden = jnp.maximum(jnp.dot(x, w1_ref[...], preferred_element_type=f32) + b1_ref[...], 0.0)
    y = jnp.dot(hidden, w2_ref[...], preferred_element_type=f32) + b2_ref[...]
    x = layernorm(x + y, g3_ref, bb3_ref)

    o_ref[...] = x.astype(o_ref.dtype)


# ------------------------------ host wrapper --------------------------------

def _split_attn(p, E):
    """Split PyTorch-layout MHA params into transposed Q/K/V/out slabs."""
    inw, inb = p["in_w"], p["in_b"]
    qw, kw, vw = inw[0:E].T, inw[E:2 * E].T, inw[2 * E:3 * E].T          # (E, E) each
    qb = inb[0:E].reshape(1, E)
    kb = inb[E:2 * E].reshape(1, E)
    vb = inb[2 * E:3 * E].reshape(1, E)
    return qw, qb, kw, kb, vw, vb, p["out_w"].T, p["out_b"].reshape(1, E)


@functools.partial(jax.jit, static_argnames=("nhead", "eps"))
def transformer_decoder_layer(params, tgt, memory, pos=None, query_pos=None,
                              nhead=4, eps=1e-5):
    """forward_post_norm semantics of the reference module (dropout = identity).

    tgt: (L, N, E); memory: (S, N, E); returns (L, N, E).
    """
    L, N, E = tgt.shape
    S = memory.shape[0]
    F = params["lin1_w"].shape[0]

    def to_slab(x, T):  # (T, N, E) -> batch-major (N*T, E)
        return jnp.transpose(x, (1, 0, 2)).reshape(N * T, E)

    tgt2 = to_slab(tgt, L)
    mem2 = to_slab(memory, S)
    qp2 = to_slab(query_pos, L) if query_pos is not None else jnp.zeros_like(tgt2)
    pp2 = to_slab(pos, S) if pos is not None else jnp.zeros_like(mem2)

    s_qw, s_qb, s_kw, s_kb, s_vw, s_vb, s_ow, s_ob = _split_attn(params["self_attn"], E)
    c_qw, c_qb, c_kw, c_kb, c_vw, c_vb, c_ow, c_ob = _split_attn(params["cross_attn"], E)

    # Fuse K / V projection weights of both attention blocks -> (E, 2E) slabs.
    kw_both = jnp.concatenate([s_kw, c_kw], axis=1)
    kb_both = jnp.concatenate([s_kb, c_kb], axis=1)
    vw_both = jnp.concatenate([s_vw, c_vw], axis=1)
    vb_both = jnp.concatenate([s_vb, c_vb], axis=1)

    args = (
        tgt2, mem2, qp2, pp2,
        s_qw, s_qb, s_ow, s_ob,
        c_qw, c_qb, c_ow, c_ob,
        kw_both, kb_both, vw_both, vb_both,
        params["lin1_w"].T, params["lin1_b"].reshape(1, F),
        params["lin2_w"].T, params["lin2_b"].reshape(1, E),
        params["norm1"]["g"].reshape(1, E), params["norm1"]["b"].reshape(1, E),
        params["norm2"]["g"].reshape(1, E), params["norm2"]["b"].reshape(1, E),
        params["norm3"]["g"].reshape(1, E), params["norm3"]["b"].reshape(1, E),
    )

    out2d = pl.pallas_call(
        functools.partial(_decoder_layer_kernel, L=L, S=S, N=N, H=nhead, eps=eps),
        out_shape=jax.ShapeDtypeStruct((N * L, E), tgt.dtype),
    )(*args)

    return out2d.reshape(N, L, E).transpose(1, 0, 2)


# ------------------------ pure-jnp reference (check) ------------------------

def _pe(x, pos):
    return x if pos is None else x + pos


def _ref_mha(q, k, v, p, nhead):
    L, N, E = q.shape
    S = k.shape[0]
    Dh = E // nhead
    w_q, w_k, w_v = p["in_w"][:E], p["in_w"][E:2 * E], p["in_w"][2 * E:]
    b_q, b_k, b_v = p["in_b"][:E], p["in_b"][E:2 * E], p["in_b"][2 * E:]
    qp = q.reshape(L * N, E) @ w_q.T + b_q
    kp = k.reshape(S * N, E) @ w_k.T + b_k
    vp = v.reshape(S * N, E) @ w_v.T + b_v
    qh = qp.reshape(L, N * nhead, Dh).transpose(1, 0, 2) / math.sqrt(Dh)
    kh = kp.reshape(S, N * nhead, Dh).transpose(1, 0, 2)
    vh = vp.reshape(S, N * nhead, Dh).transpose(1, 0, 2)
    s = jnp.einsum("bld,bsd->bls", qh, kh)
    p_ = jax.nn.softmax(s, axis=-1)
    o = jnp.einsum("bls,bsd->bld", p_, vh)
    o = o.transpose(1, 0, 2).reshape(L * N, E) @ p["out_w"].T + p["out_b"]
    return o.reshape(L, N, E)


def _ref_ln(x, g, b, eps=1e-5):
    m = jnp.mean(x, axis=-1, keepdims=True)
    v = jnp.mean((x - m) ** 2, axis=-1, keepdims=True)
    return (x - m) * jax.lax.rsqrt(v + eps) * g + b


def _ref_layer(params, tgt, memory, pos, query_pos, nhead):
    t2 = _ref_mha(_pe(tgt, query_pos), _pe(memory, pos), memory, params["self_attn"], nhead)
    tgt = _ref_ln(tgt + t2, params["norm1"]["g"], params["norm1"]["b"])
    t2 = _ref_mha(_pe(tgt, query_pos), _pe(memory, pos), memory, params["cross_attn"], nhead)
    tgt = _ref_ln(tgt + t2, params["norm2"]["g"], params["norm2"]["b"])
    h = jnp.maximum(tgt @ params["lin1_w"].T + params["lin1_b"], 0.0)
    y = h @ params["lin2_w"].T + params["lin2_b"]
    return _ref_ln(tgt + y, params["norm3"]["g"], params["norm3"]["b"])


# ---------------------------------- main ------------------------------------

def init_params(key, d_model, nhead, dim_ff):
    ks = jax.random.split(key, 8)
    s = 0.05

    def attn_params(k1, k2):
        return {
            "in_w": jax.random.normal(k1, (3 * d_model, d_model), jnp.float32) * s,
            "in_b": jnp.linspace(-0.01, 0.01, 3 * d_model, dtype=jnp.float32),
            "out_w": jax.random.normal(k2, (d_model, d_model), jnp.float32) * s,
            "out_b": jnp.linspace(0.01, -0.01, d_model, dtype=jnp.float32),
        }

    return {
        "self_attn": attn_params(ks[0], ks[1]),
        "cross_attn": attn_params(ks[2], ks[3]),
        "lin1_w": jax.random.normal(ks[4], (dim_ff, d_model), jnp.float32) * s,
        "lin1_b": jnp.linspace(-0.02, 0.02, dim_ff, dtype=jnp.float32),
        "lin2_w": jax.random.normal(ks[5], (d_model, dim_ff), jnp.float32) * s,
        "lin2_b": jnp.linspace(0.02, -0.02, d_model, dtype=jnp.float32),
        "norm1": {"g": jnp.ones((d_model,), jnp.float32), "b": jnp.zeros((d_model,), jnp.float32)},
        "norm2": {"g": jnp.full((d_model,), 1.1, jnp.float32), "b": jnp.full((d_model,), 0.05, jnp.float32)},
        "norm3": {"g": jnp.full((d_model,), 0.9, jnp.float32), "b": jnp.full((d_model,), -0.05, jnp.float32)},
    }


if __name__ == "__main__":
    d_model, nhead, dim_ff = 32, 4, 64
    L, S, N = 8, 8, 2   # tgt seq, memory seq, batch

    key = jax.random.PRNGKey(0)
    kp, kt, km, kq, kpos = jax.random.split(key, 5)
    params = init_params(kp, d_model, nhead, dim_ff)

    tgt = jax.random.normal(kt, (L, N, d_model), jnp.float32)
    memory = jax.random.normal(km, (S, N, d_model), jnp.float32)
    query_pos = jax.random.normal(kq, (L, N, d_model), jnp.float32) * 0.1
    pos = jax.random.normal(kpos, (S, N, d_model), jnp.float32) * 0.1

    out = transformer_decoder_layer(params, tgt, memory, pos=pos,
                                    query_pos=query_pos, nhead=nhead)
    out = jax.block_until_ready(out)

    ref = _ref_layer(params, tgt, memory, pos, query_pos, nhead)
    assert out.shape == (L, N, d_model)
    assert jnp.allclose(out, ref, atol=2e-3, rtol=2e-3), "mismatch vs reference"

    print("KERNEL_OK")
</pallas_src>

<mosaic_0001>
module attributes {stable_mosaic.version = 11 : i64} {
  func.func @_decoder_layer_kernel(%arg0: memref<16x32xf32, #tpu.memory_space<vmem>>, %arg1: memref<16x32xf32, #tpu.memory_space<vmem>>, %arg2: memref<16x32xf32, #tpu.memory_space<vmem>>, %arg3: memref<16x32xf32, #tpu.memory_space<vmem>>, %arg4: memref<32x32xf32, #tpu.memory_space<vmem>>, %arg5: memref<1x32xf32, #tpu.memory_space<vmem>>, %arg6: memref<32x32xf32, #tpu.memory_space<vmem>>, %arg7: memref<1x32xf32, #tpu.memory_space<vmem>>, %arg8: memref<32x32xf32, #tpu.memory_space<vmem>>, %arg9: memref<1x32xf32, #tpu.memory_space<vmem>>, %arg10: memref<32x32xf32, #tpu.memory_space<vmem>>, %arg11: memref<1x32xf32, #tpu.memory_space<vmem>>, %arg12: memref<32x64xf32, #tpu.memory_space<vmem>>, %arg13: memref<1x64xf32, #tpu.memory_space<vmem>>, %arg14: memref<32x64xf32, #tpu.memory_space<vmem>>, %arg15: memref<1x64xf32, #tpu.memory_space<vmem>>, %arg16: memref<32x64xf32, #tpu.memory_space<vmem>>, %arg17: memref<1x64xf32, #tpu.memory_space<vmem>>, %arg18: memref<64x32xf32, #tpu.memory_space<vmem>>, %arg19: memref<1x32xf32, #tpu.memory_space<vmem>>, %arg20: memref<1x32xf32, #tpu.memory_space<vmem>>, %arg21: memref<1x32xf32, #tpu.memory_space<vmem>>, %arg22: memref<1x32xf32, #tpu.memory_space<vmem>>, %arg23: memref<1x32xf32, #tpu.memory_space<vmem>>, %arg24: memref<1x32xf32, #tpu.memory_space<vmem>>, %arg25: memref<1x32xf32, #tpu.memory_space<vmem>>, %arg26: memref<16x32xf32, #tpu.memory_space<vmem>>) attributes {dimension_semantics = [], scalar_prefetch = 0 : i64, scratch_operands = 0 : i64, tpu.core_type = #tpu.core_type<tc>} {
    %c0 = arith.constant 0 : index
    %c0_0 = arith.constant 0 : index
    %0 = vector.load %arg0[%c0, %c0_0] : memref<16x32xf32, #tpu.memory_space<vmem>>, vector<16x32xf32>
    %c0_1 = arith.constant 0 : index
    %c0_2 = arith.constant 0 : index
    %1 = vector.load %arg1[%c0_1, %c0_2] : memref<16x32xf32, #tpu.memory_space<vmem>>, vector<16x32xf32>
    %c0_3 = arith.constant 0 : index
    %c0_4 = arith.constant 0 : index
    %2 = vector.load %arg2[%c0_3, %c0_4] : memref<16x32xf32, #tpu.memory_space<vmem>>, vector<16x32xf32>
    %c0_5 = arith.constant 0 : index
    %c0_6 = arith.constant 0 : index
    %3 = vector.load %arg3[%c0_5, %c0_6] : memref<16x32xf32, #tpu.memory_space<vmem>>, vector<16x32xf32>
    %4 = arith.addf %1, %3 : vector<16x32xf32>
    %c0_7 = arith.constant 0 : index
    %c0_8 = arith.constant 0 : index
    %5 = vector.load %arg12[%c0_7, %c0_8] : memref<32x64xf32, #tpu.memory_space<vmem>>, vector<32x64xf32>
    %cst = arith.constant dense<0.000000e+00> : vector<16x64xf32>
    %6 = tpu.matmul %4, %5, %cst {dimension_numbers = #tpu.dot_dimension_numbers<[1], [0], [0], [1], [0, 0, 1, 1], [], []>} : vector<16x32xf32>, vector<32x64xf32>, vector<16x64xf32> -> vector<16x64xf32>
    %c0_9 = arith.constant 0 : index
    %c0_10 = arith.constant 0 : index
    %7 = vector.load %arg13[%c0_9, %c0_10] : memref<1x64xf32, #tpu.memory_space<vmem>>, vector<1x64xf32>
    %8 = vector.broadcast %7 : vector<1x64xf32> to vector<16x64xf32>
    %9 = arith.addf %6, %8 : vector<16x64xf32>
    %c0_11 = arith.constant 0 : index
    %c0_12 = arith.constant 0 : index
    %10 = vector.load %arg14[%c0_11, %c0_12] : memref<32x64xf32, #tpu.memory_space<vmem>>, vector<32x64xf32>
    %cst_13 = arith.constant dense<0.000000e+00> : vector<16x64xf32>
    %11 = tpu.matmul %1, %10, %cst_13 {dimension_numbers = #tpu.dot_dimension_numbers<[1], [0], [0], [1], [0, 0, 1, 1], [], []>} : vector<16x32xf32>, vector<32x64xf32>, vector<16x64xf32> -> vector<16x64xf32>
    %c0_14 = arith.constant 0 : index
    %c0_15 = arith.constant 0 : index
    %12 = vector.load %arg15[%c0_14, %c0_15] : memref<1x64xf32, #tpu.memory_space<vmem>>, vector<1x64xf32>
    %13 = vector.broadcast %12 : vector<1x64xf32> to vector<16x64xf32>
    %14 = arith.addf %11, %13 : vector<16x64xf32>
    %15 = arith.addf %0, %2 : vector<16x32xf32>
    %c0_16 = arith.constant 0 : index
    %c0_17 = arith.constant 0 : index
    %16 = vector.load %arg4[%c0_16, %c0_17] : memref<32x32xf32, #tpu.memory_space<vmem>>, vector<32x32xf32>
    %cst_18 = arith.constant dense<0.000000e+00> : vector<16x32xf32>
    %17 = tpu.matmul %15, %16, %cst_18 {dimension_numbers = #tpu.dot_dimension_numbers<[1], [0], [0], [1], [0, 0, 1, 1], [], []>} : vector<16x32xf32>, vector<32x32xf32>, vector<16x32xf32> -> vector<16x32xf32>
    %c0_19 = arith.constant 0 : index
    %c0_20 = arith.constant 0 : index
    %18 = vector.load %arg5[%c0_19, %c0_20] : memref<1x32xf32, #tpu.memory_space<vmem>>, vector<1x32xf32>
    %19 = vector.broadcast %18 : vector<1x32xf32> to vector<16x32xf32>
    %20 = arith.addf %17, %19 : vector<16x32xf32>
    %cst_21 = arith.constant 0.353553385 : f32
    %21 = vector.broadcast %cst_21 : f32 to vector<16x32xf32>
    %22 = arith.mulf %20, %21 : vector<16x32xf32>
    %23 = vector.extract_strided_slice %9 {offsets = [0, 0], sizes = [16, 32], strides = [1, 1]} : vector<16x64xf32> to vector<16x32xf32>
    %24 = vector.extract_strided_slice %14 {offsets = [0, 0], sizes = [16, 32], strides = [1, 1]} : vector<16x64xf32> to vector<16x32xf32>
    %c0_22 = arith.constant 0 : index
    %c0_23 = arith.constant 0 : index
    %25 = vector.load %arg6[%c0_22, %c0_23] : memref<32x32xf32, #tpu.memory_space<vmem>>, vector<32x32xf32>
    %cst_24 = arith.constant 0.000000e+00 : f32
    %26 = vector.broadcast %cst_24 : f32 to vector<16x32xf32>
    %27 = vector.extract_strided_slice %22 {offsets = [0, 0], sizes = [16, 8], strides = [1, 1]} : vector<16x32xf32> to vector<16x8xf32>
    %28 = vector.shape_cast %27 : vector<16x8xf32> to vector<2x8x8xf32>
    %29 = vector.extract_strided_slice %23 {offsets = [0, 0], sizes = [16, 8], strides = [1, 1]} : vector<16x32xf32> to vector<16x8xf32>
    %30 = vector.shape_cast %29 : vector<16x8xf32> to vector<2x8x8xf32>
    %31 = vector.extract_strided_slice %24 {offsets = [0, 0], sizes = [16, 8], strides = [1, 1]} : vector<16x32xf32> to vector<16x8xf32>
    %32 = vector.shape_cast %31 : vector<16x8xf32> to vector<2x8x8xf32>
    "tpu.trace_start"() <{level = 10 : i32, message = "nld,nsd->nls"}> : () -> ()
    %cst_25 = arith.constant dense<0.000000e+00> : vector<2x8x8xf32>
    %33 = tpu.matmul %28, %30, %cst_25 {dimension_numbers = #tpu.dot_dimension_numbers<[2], [2], [1], [1], [0, 0, 0, 1, 1, 1], [0], [0]>} : vector<2x8x8xf32>, vector<2x8x8xf32>, vector<2x8x8xf32> -> vector<2x8x8xf32>
    "tpu.trace_stop"() : () -> ()
    %cst_26 = arith.constant dense<0xFF800000> : vector<2x8xf32>
    %34 = vector.multi_reduction <maximumf>, %33, %cst_26 [2] : vector<2x8x8xf32> to vector<2x8xf32>
    %35 = vector.shape_cast %34 : vector<2x8xf32> to vector<2x8x1xf32>
    %36 = vector.broadcast %35 : vector<2x8x1xf32> to vector<2x8x8xf32>
    %37 = arith.subf %33, %36 : vector<2x8x8xf32>
    %38 = math.exp %37 : vector<2x8x8xf32>
    %cst_27 = arith.constant dense<0.000000e+00> : vector<2x8xf32>
    %39 = vector.multi_reduction <add>, %38, %cst_27 [2] : vector<2x8x8xf32> to vector<2x8xf32>
    %40 = vector.shape_cast %39 : vector<2x8xf32> to vector<2x8x1xf32>
    %41 = tpu.reciprocal %40 : vector<2x8x1xf32> -> vector<2x8x1xf32>
    %42 = vector.broadcast %41 : vector<2x8x1xf32> to vector<2x8x8xf32>
    %43 = arith.mulf %38, %42 : vector<2x8x8xf32>
    "tpu.trace_start"() <{level = 10 : i32, message = "nls,nsd->nld"}> : () -> ()
    %cst_28 = arith.constant dense<0.000000e+00> : vector<2x8x8xf32>
    %44 = tpu.matmul %43, %32, %cst_28 {dimension_numbers = #tpu.dot_dimension_numbers<[2], [1], [1], [2], [0, 0, 0, 1, 1, 2], [0], [0]>} : vector<2x8x8xf32>, vector<2x8x8xf32>, vector<2x8x8xf32> -> vector<2x8x8xf32>
    "tpu.trace_stop"() : () -> ()
    %45 = vector.shape_cast %44 : vector<2x8x8xf32> to vector<16x8xf32>
    %46 = vector.extract_strided_slice %25 {offsets = [0, 0], sizes = [8, 32], strides = [1, 1]} : vector<32x32xf32> to vector<8x32xf32>
    %cst_29 = arith.constant dense<0.000000e+00> : vector<16x32xf32>
    %47 = tpu.matmul %45, %46, %cst_29 {dimension_numbers = #tpu.dot_dimension_numbers<[1], [0], [0], [1], [0, 0, 1, 1], [], []>} : vector<16x8xf32>, vector<8x32xf32>, vector<16x32xf32> -> vector<16x32xf32>
    %48 = arith.addf %26, %47 : vector<16x32xf32>
    %49 = vector.extract_strided_slice %22 {offsets = [0, 8], sizes = [16, 8], strides = [1, 1]} : vector<16x32xf32> to vector<16x8xf32>
    %50 = vector.shape_cast %49 : vector<16x8xf32> to vector<2x8x8xf32>
    %51 = vector.extract_strided_slice %23 {offsets = [0, 8], sizes = [16, 8], strides = [1, 1]} : vector<16x32xf32> to vector<16x8xf32>
    %52 = vector.shape_cast %51 : vector<16x8xf32> to vector<2x8x8xf32>
    %53 = vector.extract_strided_slice %24 {offsets = [0, 8], sizes = [16, 8], strides = [1, 1]} : vector<16x32xf32> to vector<16x8xf32>
    %54 = vector.shape_cast %53 : vector<16x8xf32> to vector<2x8x8xf32>
    "tpu.trace_start"() <{level = 10 : i32, message = "nld,nsd->nls"}> : () -> ()
    %cst_30 = arith.constant dense<0.000000e+00> : vector<2x8x8xf32>
    %55 = tpu.matmul %50, %52, %cst_30 {dimension_numbers = #tpu.dot_dimension_numbers<[2], [2], [1], [1], [0, 0, 0, 1, 1, 1], [0], [0]>} : vector<2x8x8xf32>, vector<2x8x8xf32>, vector<2x8x8xf32> -> vector<2x8x8xf32>
    "tpu.trace_stop"() : () -> ()
    %cst_31 = arith.constant dense<0xFF800000> : vector<2x8xf32>
    %56 = vector.multi_reduction <maximumf>, %55, %cst_31 [2] : vector<2x8x8xf32> to vector<2x8xf32>
    %57 = vector.shape_cast %56 : vector<2x8xf32> to vector<2x8x1xf32>
    %58 = vector.broadcast %57 : vector<2x8x1xf32> to vector<2x8x8xf32>
    %59 = arith.subf %55, %58 : vector<2x8x8xf32>
    %60 = math.exp %59 : vector<2x8x8xf32>
    %cst_32 = arith.constant dense<0.000000e+00> : vector<2x8xf32>
    %61 = vector.multi_reduction <add>, %60, %cst_32 [2] : vector<2x8x8xf32> to vector<2x8xf32>
    %62 = vector.shape_cast %61 : vector<2x8xf32> to vector<2x8x1xf32>
    %63 = tpu.reciprocal %62 : vector<2x8x1xf32> -> vector<2x8x1xf32>
    %64 = vector.broadcast %63 : vector<2x8x1xf32> to vector<2x8x8xf32>
    %65 = arith.mulf %60, %64 : vector<2x8x8xf32>
    "tpu.trace_start"() <{level = 10 : i32, message = "nls,nsd->nld"}> : () -> ()
    %cst_33 = arith.constant dense<0.000000e+00> : vector<2x8x8xf32>
    %66 = tpu.matmul %65, %54, %cst_33 {dimension_numbers = #tpu.dot_dimension_numbers<[2], [1], [1], [2], [0, 0, 0, 1, 1, 2], [0], [0]>} : vector<2x8x8xf32>, vector<2x8x8xf32>, vector<2x8x8xf32> -> vector<2x8x8xf32>
    "tpu.trace_stop"() : () -> ()
    %67 = vector.shape_cast %66 : vector<2x8x8xf32> to vector<16x8xf32>
    %68 = vector.extract_strided_slice %25 {offsets = [8, 0], sizes = [8, 32], strides = [1, 1]} : vector<32x32xf32> to vector<8x32xf32>
    %cst_34 = arith.constant dense<0.000000e+00> : vector<16x32xf32>
    %69 = tpu.matmul %67, %68, %cst_34 {dimension_numbers = #tpu.dot_dimension_numbers<[1], [0], [0], [1], [0, 0, 1, 1], [], []>} : vector<16x8xf32>, vector<8x32xf32>, vector<16x32xf32> -> vector<16x32xf32>
    %70 = arith.addf %48, %69 : vector<16x32xf32>
    %71 = vector.extract_strided_slice %22 {offsets = [0, 16], sizes = [16, 8], strides = [1, 1]} : vector<16x32xf32> to vector<16x8xf32>
    %72 = vector.shape_cast %71 : vector<16x8xf32> to vector<2x8x8xf32>
    %73 = vector.extract_strided_slice %23 {offsets = [0, 16], sizes = [16, 8], strides = [1, 1]} : vector<16x32xf32> to vector<16x8xf32>
    %74 = vector.shape_cast %73 : vector<16x8xf32> to vector<2x8x8xf32>
    %75 = vector.extract_strided_slice %24 {offsets = [0, 16], sizes = [16, 8], strides = [1, 1]} : vector<16x32xf32> to vector<16x8xf32>
    %76 = vector.shape_cast %75 : vector<16x8xf32> to vector<2x8x8xf32>
    "tpu.trace_start"() <{level = 10 : i32, message = "nld,nsd->nls"}> : () -> ()
    %cst_35 = arith.constant dense<0.000000e+00> : vector<2x8x8xf32>
    %77 = tpu.matmul %72, %74, %cst_35 {dimension_numbers = #tpu.dot_dimension_numbers<[2], [2], [1], [1], [0, 0, 0, 1, 1, 1], [0], [0]>} : vector<2x8x8xf32>, vector<2x8x8xf32>, vector<2x8x8xf32> -> vector<2x8x8xf32>
    "tpu.trace_stop"() : () -> ()
    %cst_36 = arith.constant dense<0xFF800000> : vector<2x8xf32>
    %78 = vector.multi_reduction <maximumf>, %77, %cst_36 [2] : vector<2x8x8xf32> to vector<2x8xf32>
    %79 = vector.shape_cast %78 : vector<2x8xf32> to vector<2x8x1xf32>
    %80 = vector.broadcast %79 : vector<2x8x1xf32> to vector<2x8x8xf32>
    %81 = arith.subf %77, %80 : vector<2x8x8xf32>
    %82 = math.exp %81 : vector<2x8x8xf32>
    %cst_37 = arith.constant dense<0.000000e+00> : vector<2x8xf32>
    %83 = vector.multi_reduction <add>, %82, %cst_37 [2] : vector<2x8x8xf32> to vector<2x8xf32>
    %84 = vector.shape_cast %83 : vector<2x8xf32> to vector<2x8x1xf32>
    %85 = tpu.reciprocal %84 : vector<2x8x1xf32> -> vector<2x8x1xf32>
    %86 = vector.broadcast %85 : vector<2x8x1xf32> to vector<2x8x8xf32>
    %87 = arith.mulf %82, %86 : vector<2x8x8xf32>
    "tpu.trace_start"() <{level = 10 : i32, message = "nls,nsd->nld"}> : () -> ()
    %cst_38 = arith.constant dense<0.000000e+00> : vector<2x8x8xf32>
    %88 = tpu.matmul %87, %76, %cst_38 {dimension_numbers = #tpu.dot_dimension_numbers<[2], [1], [1], [2], [0, 0, 0, 1, 1, 2], [0], [0]>} : vector<2x8x8xf32>, vector<2x8x8xf32>, vector<2x8x8xf32> -> vector<2x8x8xf32>
    "tpu.trace_stop"() : () -> ()
    %89 = vector.shape_cast %88 : vector<2x8x8xf32> to vector<16x8xf32>
    %90 = vector.extract_strided_slice %25 {offsets = [16, 0], sizes = [8, 32], strides = [1, 1]} : vector<32x32xf32> to vector<8x32xf32>
    %cst_39 = arith.constant dense<0.000000e+00> : vector<16x32xf32>
    %91 = tpu.matmul %89, %90, %cst_39 {dimension_numbers = #tpu.dot_dimension_numbers<[1], [0], [0], [1], [0, 0, 1, 1], [], []>} : vector<16x8xf32>, vector<8x32xf32>, vector<16x32xf32> -> vector<16x32xf32>
    %92 = arith.addf %70, %91 : vector<16x32xf32>
    %93 = vector.extract_strided_slice %22 {offsets = [0, 24], sizes = [16, 8], strides = [1, 1]} : vector<16x32xf32> to vector<16x8xf32>
    %94 = vector.shape_cast %93 : vector<16x8xf32> to vector<2x8x8xf32>
    %95 = vector.extract_strided_slice %23 {offsets = [0, 24], sizes = [16, 8], strides = [1, 1]} : vector<16x32xf32> to vector<16x8xf32>
    %96 = vector.shape_cast %95 : vector<16x8xf32> to vector<2x8x8xf32>
    %97 = vector.extract_strided_slice %24 {offsets = [0, 24], sizes = [16, 8], strides = [1, 1]} : vector<16x32xf32> to vector<16x8xf32>
    %98 = vector.shape_cast %97 : vector<16x8xf32> to vector<2x8x8xf32>
    "tpu.trace_start"() <{level = 10 : i32, message = "nld,nsd->nls"}> : () -> ()
    %cst_40 = arith.constant dense<0.000000e+00> : vector<2x8x8xf32>
    %99 = tpu.matmul %94, %96, %cst_40 {dimension_numbers = #tpu.dot_dimension_numbers<[2], [2], [1], [1], [0, 0, 0, 1, 1, 1], [0], [0]>} : vector<2x8x8xf32>, vector<2x8x8xf32>, vector<2x8x8xf32> -> vector<2x8x8xf32>
    "tpu.trace_stop"() : () -> ()
    %cst_41 = arith.constant dense<0xFF800000> : vector<2x8xf32>
    %100 = vector.multi_reduction <maximumf>, %99, %cst_41 [2] : vector<2x8x8xf32> to vector<2x8xf32>
    %101 = vector.shape_cast %100 : vector<2x8xf32> to vector<2x8x1xf32>
    %102 = vector.broadcast %101 : vector<2x8x1xf32> to vector<2x8x8xf32>
    %103 = arith.subf %99, %102 : vector<2x8x8xf32>
    %104 = math.exp %103 : vector<2x8x8xf32>
    %cst_42 = arith.constant dense<0.000000e+00> : vector<2x8xf32>
    %105 = vector.multi_reduction <add>, %104, %cst_42 [2] : vector<2x8x8xf32> to vector<2x8xf32>
    %106 = vector.shape_cast %105 : vector<2x8xf32> to vector<2x8x1xf32>
    %107 = tpu.reciprocal %106 : vector<2x8x1xf32> -> vector<2x8x1xf32>
    %108 = vector.broadcast %107 : vector<2x8x1xf32> to vector<2x8x8xf32>
    %109 = arith.mulf %104, %108 : vector<2x8x8xf32>
    "tpu.trace_start"() <{level = 10 : i32, message = "nls,nsd->nld"}> : () -> ()
    %cst_43 = arith.constant dense<0.000000e+00> : vector<2x8x8xf32>
    %110 = tpu.matmul %109, %98, %cst_43 {dimension_numbers = #tpu.dot_dimension_numbers<[2], [1], [1], [2], [0, 0, 0, 1, 1, 2], [0], [0]>} : vector<2x8x8xf32>, vector<2x8x8xf32>, vector<2x8x8xf32> -> vector<2x8x8xf32>
    "tpu.trace_stop"() : () -> ()
    %111 = vector.shape_cast %110 : vector<2x8x8xf32> to vector<16x8xf32>
    %112 = vector.extract_strided_slice %25 {offsets = [24, 0], sizes = [8, 32], strides = [1, 1]} : vector<32x32xf32> to vector<8x32xf32>
    %cst_44 = arith.constant dense<0.000000e+00> : vector<16x32xf32>
    %113 = tpu.matmul %111, %112, %cst_44 {dimension_numbers = #tpu.dot_dimension_numbers<[1], [0], [0], [1], [0, 0, 1, 1], [], []>} : vector<16x8xf32>, vector<8x32xf32>, vector<16x32xf32> -> vector<16x32xf32>
    %114 = arith.addf %92, %113 : vector<16x32xf32>
    %c0_45 = arith.constant 0 : index
    %c0_46 = arith.constant 0 : index
    %115 = vector.load %arg7[%c0_45, %c0_46] : memref<1x32xf32, #tpu.memory_space<vmem>>, vector<1x32xf32>
    %116 = vector.broadcast %115 : vector<1x32xf32> to vector<16x32xf32>
    %117 = arith.addf %114, %116 : vector<16x32xf32>
    %118 = arith.addf %0, %117 : vector<16x32xf32>
    %cst_47 = arith.constant dense<0.000000e+00> : vector<16xf32>
    %119 = vector.multi_reduction <add>, %118, %cst_47 [1] : vector<16x32xf32> to vector<16xf32>
    %120 = vector.shape_cast %119 : vector<16xf32> to vector<16x1xf32>
    %cst_48 = arith.constant 3.200000e+01 : f32
    %121 = vector.broadcast %cst_48 : f32 to vector<16x1xf32>
    %122 = arith.divf %120, %121 : vector<16x1xf32>
    %123 = vector.broadcast %122 : vector<16x1xf32> to vector<16x32xf32>
    %124 = arith.subf %118, %123 : vector<16x32xf32>
    %125 = arith.mulf %124, %124 : vector<16x32xf32>
    %cst_49 = arith.constant dense<0.000000e+00> : vector<16xf32>
    %126 = vector.multi_reduction <add>, %125, %cst_49 [1] : vector<16x32xf32> to vector<16xf32>
    %127 = vector.shape_cast %126 : vector<16xf32> to vector<16x1xf32>
    %cst_50 = arith.constant 3.200000e+01 : f32
    %128 = vector.broadcast %cst_50 : f32 to vector<16x1xf32>
    %129 = arith.divf %127, %128 : vector<16x1xf32>
    %cst_51 = arith.constant 9.99999974E-6 : f32
    %130 = vector.broadcast %cst_51 : f32 to vector<16x1xf32>
    %131 = arith.addf %129, %130 : vector<16x1xf32>
    %132 = math.rsqrt %131 : vector<16x1xf32>
    %133 = vector.broadcast %132 : vector<16x1xf32> to vector<16x32xf32>
    %134 = arith.mulf %124, %133 : vector<16x32xf32>
    %c0_52 = arith.constant 0 : index
    %c0_53 = arith.constant 0 : index
    %135 = vector.load %arg20[%c0_52, %c0_53] : memref<1x32xf32, #tpu.memory_space<vmem>>, vector<1x32xf32>
    %136 = vector.broadcast %135 : vector<1x32xf32> to vector<16x32xf32>
    %137 = arith.mulf %134, %136 : vector<16x32xf32>
    %c0_54 = arith.constant 0 : index
    %c0_55 = arith.constant 0 : index
    %138 = vector.load %arg21[%c0_54, %c0_55] : memref<1x32xf32, #tpu.memory_space<vmem>>, vector<1x32xf32>
    %139 = vector.broadcast %138 : vector<1x32xf32> to vector<16x32xf32>
    %140 = arith.addf %137, %139 : vector<16x32xf32>
    %141 = arith.addf %140, %2 : vector<16x32xf32>
    %c0_56 = arith.constant 0 : index
    %c0_57 = arith.constant 0 : index
    %142 = vector.load %arg8[%c0_56, %c0_57] : memref<32x32xf32, #tpu.memory_space<vmem>>, vector<32x32xf32>
    %cst_58 = arith.constant dense<0.000000e+00> : vector<16x32xf32>
    %143 = tpu.matmul %141, %142, %cst_58 {dimension_numbers = #tpu.dot_dimension_numbers<[1], [0], [0], [1], [0, 0, 1, 1], [], []>} : vector<16x32xf32>, vector<32x32xf32>, vector<16x32xf32> -> vector<16x32xf32>
    %c0_59 = arith.constant 0 : index
    %c0_60 = arith.constant 0 : index
    %144 = vector.load %arg9[%c0_59, %c0_60] : memref<1x32xf32, #tpu.memory_space<vmem>>, vector<1x32xf32>
    %145 = vector.broadcast %144 : vector<1x32xf32> to vector<16x32xf32>
    %146 = arith.addf %143, %145 : vector<16x32xf32>
    %cst_61 = arith.constant 0.353553385 : f32
    %147 = vector.broadcast %cst_61 : f32 to vector<16x32xf32>
    %148 = arith.mulf %146, %147 : vector<16x32xf32>
    %149 = vector.extract_strided_slice %9 {offsets = [0, 32], sizes = [16, 32], strides = [1, 1]} : vector<16x64xf32> to vector<16x32xf32>
    %150 = vector.extract_strided_slice %14 {offsets = [0, 32], sizes = [16, 32], strides = [1, 1]} : vector<16x64xf32> to vector<16x32xf32>
    %c0_62 = arith.constant 0 : index
    %c0_63 = arith.constant 0 : index
    %151 = vector.load %arg10[%c0_62, %c0_63] : memref<32x32xf32, #tpu.memory_space<vmem>>, vector<32x32xf32>
    %cst_64 = arith.constant 0.000000e+00 : f32
    %152 = vector.broadcast %cst_64 : f32 to vector<16x32xf32>
    %153 = vector.extract_strided_slice %148 {offsets = [0, 0], sizes = [16, 8], strides = [1, 1]} : vector<16x32xf32> to vector<16x8xf32>
    %154 = vector.shape_cast %153 : vector<16x8xf32> to vector<2x8x8xf32>
    %155 = vector.extract_strided_slice %149 {offsets = [0, 0], sizes = [16, 8], strides = [1, 1]} : vector<16x32xf32> to vector<16x8xf32>
    %156 = vector.shape_cast %155 : vector<16x8xf32> to vector<2x8x8xf32>
    %157 = vector.extract_strided_slice %150 {offsets = [0, 0], sizes = [16, 8], strides = [1, 1]} : vector<16x32xf32> to vector<16x8xf32>
    %158 = vector.shape_cast %157 : vector<16x8xf32> to vector<2x8x8xf32>
    "tpu.trace_start"() <{level = 10 : i32, message = "nld,nsd->nls"}> : () -> ()
    %cst_65 = arith.constant dense<0.000000e+00> : vector<2x8x8xf32>
    %159 = tpu.matmul %154, %156, %cst_65 {dimension_numbers = #tpu.dot_dimension_numbers<[2], [2], [1], [1], [0, 0, 0, 1, 1, 1], [0], [0]>} : vector<2x8x8xf32>, vector<2x8x8xf32>, vector<2x8x8xf32> -> vector<2x8x8xf32>
    "tpu.trace_stop"() : () -> ()
    %cst_66 = arith.constant dense<0xFF800000> : vector<2x8xf32>
    %160 = vector.multi_reduction <maximumf>, %159, %cst_66 [2] : vector<2x8x8xf32> to vector<2x8xf32>
    %161 = vector.shape_cast %160 : vector<2x8xf32> to vector<2x8x1xf32>
    %162 = vector.broadcast %161 : vector<2x8x1xf32> to vector<2x8x8xf32>
    %163 = arith.subf %159, %162 : vector<2x8x8xf32>
    %164 = math.exp %163 : vector<2x8x8xf32>
    %cst_67 = arith.constant dense<0.000000e+00> : vector<2x8xf32>
    %165 = vector.multi_reduction <add>, %164, %cst_67 [2] : vector<2x8x8xf32> to vector<2x8xf32>
    %166 = vector.shape_cast %165 : vector<2x8xf32> to vector<2x8x1xf32>
    %167 = tpu.reciprocal %166 : vector<2x8x1xf32> -> vector<2x8x1xf32>
    %168 = vector.broadcast %167 : vector<2x8x1xf32> to vector<2x8x8xf32>
    %169 = arith.mulf %164, %168 : vector<2x8x8xf32>
    "tpu.trace_start"() <{level = 10 : i32, message = "nls,nsd->nld"}> : () -> ()
    %cst_68 = arith.constant dense<0.000000e+00> : vector<2x8x8xf32>
    %170 = tpu.matmul %169, %158, %cst_68 {dimension_numbers = #tpu.dot_dimension_numbers<[2], [1], [1], [2], [0, 0, 0, 1, 1, 2], [0], [0]>} : vector<2x8x8xf32>, vector<2x8x8xf32>, vector<2x8x8xf32> -> vector<2x8x8xf32>
    "tpu.trace_stop"() : () -> ()
    %171 = vector.shape_cast %170 : vector<2x8x8xf32> to vector<16x8xf32>
    %172 = vector.extract_strided_slice %151 {offsets = [0, 0], sizes = [8, 32], strides = [1, 1]} : vector<32x32xf32> to vector<8x32xf32>
    %cst_69 = arith.constant dense<0.000000e+00> : vector<16x32xf32>
    %173 = tpu.matmul %171, %172, %cst_69 {dimension_numbers = #tpu.dot_dimension_numbers<[1], [0], [0], [1], [0, 0, 1, 1], [], []>} : vector<16x8xf32>, vector<8x32xf32>, vector<16x32xf32> -> vector<16x32xf32>
    %174 = arith.addf %152, %173 : vector<16x32xf32>
    %175 = vector.extract_strided_slice %148 {offsets = [0, 8], sizes = [16, 8], strides = [1, 1]} : vector<16x32xf32> to vector<16x8xf32>
    %176 = vector.shape_cast %175 : vector<16x8xf32> to vector<2x8x8xf32>
    %177 = vector.extract_strided_slice %149 {offsets = [0, 8], sizes = [16, 8], strides = [1, 1]} : vector<16x32xf32> to vector<16x8xf32>
    %178 = vector.shape_cast %177 : vector<16x8xf32> to vector<2x8x8xf32>
    %179 = vector.extract_strided_slice %150 {offsets = [0, 8], sizes = [16, 8], strides = [1, 1]} : vector<16x32xf32> to vector<16x8xf32>
    %180 = vector.shape_cast %179 : vector<16x8xf32> to vector<2x8x8xf32>
    "tpu.trace_start"() <{level = 10 : i32, message = "nld,nsd->nls"}> : () -> ()
    %cst_70 = arith.constant dense<0.000000e+00> : vector<2x8x8xf32>
    %181 = tpu.matmul %176, %178, %cst_70 {dimension_numbers = #tpu.dot_dimension_numbers<[2], [2], [1], [1], [0, 0, 0, 1, 1, 1], [0], [0]>} : vector<2x8x8xf32>, vector<2x8x8xf32>, vector<2x8x8xf32> -> vector<2x8x8xf32>
    "tpu.trace_stop"() : () -> ()
    %cst_71 = arith.constant dense<0xFF800000> : vector<2x8xf32>
    %182 = vector.multi_reduction <maximumf>, %181, %cst_71 [2] : vector<2x8x8xf32> to vector<2x8xf32>
    %183 = vector.shape_cast %182 : vector<2x8xf32> to vector<2x8x1xf32>
    %184 = vector.broadcast %183 : vector<2x8x1xf32> to vector<2x8x8xf32>
    %185 = arith.subf %181, %184 : vector<2x8x8xf32>
    %186 = math.exp %185 : vector<2x8x8xf32>
    %cst_72 = arith.constant dense<0.000000e+00> : vector<2x8xf32>
    %187 = vector.multi_reduction <add>, %186, %cst_72 [2] : vector<2x8x8xf32> to vector<2x8xf32>
    %188 = vector.shape_cast %187 : vector<2x8xf32> to vector<2x8x1xf32>
    %189 = tpu.reciprocal %188 : vector<2x8x1xf32> -> vector<2x8x1xf32>
    %190 = vector.broadcast %189 : vector<2x8x1xf32> to vector<2x8x8xf32>
    %191 = arith.mulf %186, %190 : vector<2x8x8xf32>
    "tpu.trace_start"() <{level = 10 : i32, message = "nls,nsd->nld"}> : () -> ()
    %cst_73 = arith.constant dense<0.000000e+00> : vector<2x8x8xf32>
    %192 = tpu.matmul %191, %180, %cst_73 {dimension_numbers = #tpu.dot_dimension_numbers<[2], [1], [1], [2], [0, 0, 0, 1, 1, 2], [0], [0]>} : vector<2x8x8xf32>, vector<2x8x8xf32>, vector<2x8x8xf32> -> vector<2x8x8xf32>
    "tpu.trace_stop"() : () -> ()
    %193 = vector.shape_cast %192 : vector<2x8x8xf32> to vector<16x8xf32>
    %194 = vector.extract_strided_slice %151 {offsets = [8, 0], sizes = [8, 32], strides = [1, 1]} : vector<32x32xf32> to vector<8x32xf32>
    %cst_74 = arith.constant dense<0.000000e+00> : vector<16x32xf32>
    %195 = tpu.matmul %193, %194, %cst_74 {dimension_numbers = #tpu.dot_dimension_numbers<[1], [0], [0], [1], [0, 0, 1, 1], [], []>} : vector<16x8xf32>, vector<8x32xf32>, vector<16x32xf32> -> vector<16x32xf32>
    %196 = arith.addf %174, %195 : vector<16x32xf32>
    %197 = vector.extract_strided_slice %148 {offsets = [0, 16], sizes = [16, 8], strides = [1, 1]} : vector<16x32xf32> to vector<16x8xf32>
    %198 = vector.shape_cast %197 : vector<16x8xf32> to vector<2x8x8xf32>
    %199 = vector.extract_strided_slice %149 {offsets = [0, 16], sizes = [16, 8], strides = [1, 1]} : vector<16x32xf32> to vector<16x8xf32>
    %200 = vector.shape_cast %199 : vector<16x8xf32> to vector<2x8x8xf32>
    %201 = vector.extract_strided_slice %150 {offsets = [0, 16], sizes = [16, 8], strides = [1, 1]} : vector<16x32xf32> to vector<16x8xf32>
    %202 = vector.shape_cast %201 : vector<16x8xf32> to vector<2x8x8xf32>
    "tpu.trace_start"() <{level = 10 : i32, message = "nld,nsd->nls"}> : () -> ()
    %cst_75 = arith.constant dense<0.000000e+00> : vector<2x8x8xf32>
    %203 = tpu.matmul %198, %200, %cst_75 {dimension_numbers = #tpu.dot_dimension_numbers<[2], [2], [1], [1], [0, 0, 0, 1, 1, 1], [0], [0]>} : vector<2x8x8xf32>, vector<2x8x8xf32>, vector<2x8x8xf32> -> vector<2x8x8xf32>
    "tpu.trace_stop"() : () -> ()
    %cst_76 = arith.constant dense<0xFF800000> : vector<2x8xf32>
    %204 = vector.multi_reduction <maximumf>, %203, %cst_76 [2] : vector<2x8x8xf32> to vector<2x8xf32>
    %205 = vector.shape_cast %204 : vector<2x8xf32> to vector<2x8x1xf32>
    %206 = vector.broadcast %205 : vector<2x8x1xf32> to vector<2x8x8xf32>
    %207 = arith.subf %203, %206 : vector<2x8x8xf32>
    %208 = math.exp %207 : vector<2x8x8xf32>
    %cst_77 = arith.constant dense<0.000000e+00> : vector<2x8xf32>
    %209 = vector.multi_reduction <add>, %208, %cst_77 [2] : vector<2x8x8xf32> to vector<2x8xf32>
    %210 = vector.shape_cast %209 : vector<2x8xf32> to vector<2x8x1xf32>
    %211 = tpu.reciprocal %210 : vector<2x8x1xf32> -> vector<2x8x1xf32>
    %212 = vector.broadcast %211 : vector<2x8x1xf32> to vector<2x8x8xf32>
    %213 = arith.mulf %208, %212 : vector<2x8x8xf32>
    "tpu.trace_start"() <{level = 10 : i32, message = "nls,nsd->nld"}> : () -> ()
    %cst_78 = arith.constant dense<0.000000e+00> : vector<2x8x8xf32>
    %214 = tpu.matmul %213, %202, %cst_78 {dimension_numbers = #tpu.dot_dimension_numbers<[2], [1], [1], [2], [0, 0, 0, 1, 1, 2], [0], [0]>} : vector<2x8x8xf32>, vector<2x8x8xf32>, vector<2x8x8xf32> -> vector<2x8x8xf32>
    "tpu.trace_stop"() : () -> ()
    %215 = vector.shape_cast %214 : vector<2x8x8xf32> to vector<16x8xf32>
    %216 = vector.extract_strided_slice %151 {offsets = [16, 0], sizes = [8, 32], strides = [1, 1]} : vector<32x32xf32> to vector<8x32xf32>
    %cst_79 = arith.constant dense<0.000000e+00> : vector<16x32xf32>
    %217 = tpu.matmul %215, %216, %cst_79 {dimension_numbers = #tpu.dot_dimension_numbers<[1], [0], [0], [1], [0, 0, 1, 1], [], []>} : vector<16x8xf32>, vector<8x32xf32>, vector<16x32xf32> -> vector<16x32xf32>
    %218 = arith.addf %196, %217 : vector<16x32xf32>
    %219 = vector.extract_strided_slice %148 {offsets = [0, 24], sizes = [16, 8], strides = [1, 1]} : vector<16x32xf32> to vector<16x8xf32>
    %220 = vector.shape_cast %219 : vector<16x8xf32> to vector<2x8x8xf32>
    %221 = vector.extract_strided_slice %149 {offsets = [0, 24], sizes = [16, 8], strides = [1, 1]} : vector<16x32xf32> to vector<16x8xf32>
    %222 = vector.shape_cast %221 : vector<16x8xf32> to vector<2x8x8xf32>
    %223 = vector.extract_strided_slice %150 {offsets = [0, 24], sizes = [16, 8], strides = [1, 1]} : vector<16x32xf32> to vector<16x8xf32>
    %224 = vector.shape_cast %223 : vector<16x8xf32> to vector<2x8x8xf32>
    "tpu.trace_start"() <{level = 10 : i32, message = "nld,nsd->nls"}> : () -> ()
    %cst_80 = arith.constant dense<0.000000e+00> : vector<2x8x8xf32>
    %225 = tpu.matmul %220, %222, %cst_80 {dimension_numbers = #tpu.dot_dimension_numbers<[2], [2], [1], [1], [0, 0, 0, 1, 1, 1], [0], [0]>} : vector<2x8x8xf32>, vector<2x8x8xf32>, vector<2x8x8xf32> -> vector<2x8x8xf32>
    "tpu.trace_stop"() : () -> ()
    %cst_81 = arith.constant dense<0xFF800000> : vector<2x8xf32>
    %226 = vector.multi_reduction <maximumf>, %225, %cst_81 [2] : vector<2x8x8xf32> to vector<2x8xf32>
    %227 = vector.shape_cast %226 : vector<2x8xf32> to vector<2x8x1xf32>
    %228 = vector.broadcast %227 : vector<2x8x1xf32> to vector<2x8x8xf32>
    %229 = arith.subf %225, %228 : vector<2x8x8xf32>
    %230 = math.exp %229 : vector<2x8x8xf32>
    %cst_82 = arith.constant dense<0.000000e+00> : vector<2x8xf32>
    %231 = vector.multi_reduction <add>, %230, %cst_82 [2] : vector<2x8x8xf32> to vector<2x8xf32>
    %232 = vector.shape_cast %231 : vector<2x8xf32> to vector<2x8x1xf32>
    %233 = tpu.reciprocal %232 : vector<2x8x1xf32> -> vector<2x8x1xf32>
    %234 = vector.broadcast %233 : vector<2x8x1xf32> to vector<2x8x8xf32>
    %235 = arith.mulf %230, %234 : vector<2x8x8xf32>
    "tpu.trace_start"() <{level = 10 : i32, message = "nls,nsd->nld"}> : () -> ()
    %cst_83 = arith.constant dense<0.000000e+00> : vector<2x8x8xf32>
    %236 = tpu.matmul %235, %224, %cst_83 {dimension_numbers = #tpu.dot_dimension_numbers<[2], [1], [1], [2], [0, 0, 0, 1, 1, 2], [0], [0]>} : vector<2x8x8xf32>, vector<2x8x8xf32>, vector<2x8x8xf32> -> vector<2x8x8xf32>
    "tpu.trace_stop"() : () -> ()
    %237 = vector.shape_cast %236 : vector<2x8x8xf32> to vector<16x8xf32>
    %238 = vector.extract_strided_slice %151 {offsets = [24, 0], sizes = [8, 32], strides = [1, 1]} : vector<32x32xf32> to vector<8x32xf32>
    %cst_84 = arith.constant dense<0.000000e+00> : vector<16x32xf32>
    %239 = tpu.matmul %237, %238, %cst_84 {dimension_numbers = #tpu.dot_dimension_numbers<[1], [0], [0], [1], [0, 0, 1, 1], [], []>} : vector<16x8xf32>, vector<8x32xf32>, vector<16x32xf32> -> vector<16x32xf32>
    %240 = arith.addf %218, %239 : vector<16x32xf32>
    %c0_85 = arith.constant 0 : index
    %c0_86 = arith.constant 0 : index
    %241 = vector.load %arg11[%c0_85, %c0_86] : memref<1x32xf32, #tpu.memory_space<vmem>>, vector<1x32xf32>
    %242 = vector.broadcast %241 : vector<1x32xf32> to vector<16x32xf32>
    %243 = arith.addf %240, %242 : vector<16x32xf32>
    %244 = arith.addf %140, %243 : vector<16x32xf32>
    %cst_87 = arith.constant dense<0.000000e+00> : vector<16xf32>
    %245 = vector.multi_reduction <add>, %244, %cst_87 [1] : vector<16x32xf32> to vector<16xf32>
    %246 = vector.shape_cast %245 : vector<16xf32> to vector<16x1xf32>
    %cst_88 = arith.constant 3.200000e+01 : f32
    %247 = vector.broadcast %cst_88 : f32 to vector<16x1xf32>
    %248 = arith.divf %246, %247 : vector<16x1xf32>
    %249 = vector.broadcast %248 : vector<16x1xf32> to vector<16x32xf32>
    %250 = arith.subf %244, %249 : vector<16x32xf32>
    %251 = arith.mulf %250, %250 : vector<16x32xf32>
    %cst_89 = arith.constant dense<0.000000e+00> : vector<16xf32>
    %252 = vector.multi_reduction <add>, %251, %cst_89 [1] : vector<16x32xf32> to vector<16xf32>
    %253 = vector.shape_cast %252 : vector<16xf32> to vector<16x1xf32>
    %cst_90 = arith.constant 3.200000e+01 : f32
    %254 = vector.broadcast %cst_90 : f32 to vector<16x1xf32>
    %255 = arith.divf %253, %254 : vector<16x1xf32>
    %cst_91 = arith.constant 9.99999974E-6 : f32
    %256 = vector.broadcast %cst_91 : f32 to vector<16x1xf32>
    %257 = arith.addf %255, %256 : vector<16x1xf32>
    %258 = math.rsqrt %257 : vector<16x1xf32>
    %259 = vector.broadcast %258 : vector<16x1xf32> to vector<16x32xf32>
    %260 = arith.mulf %250, %259 : vector<16x32xf32>
    %c0_92 = arith.constant 0 : index
    %c0_93 = arith.constant 0 : index
    %261 = vector.load %arg22[%c0_92, %c0_93] : memref<1x32xf32, #tpu.memory_space<vmem>>, vector<1x32xf32>
    %262 = vector.broadcast %261 : vector<1x32xf32> to vector<16x32xf32>
    %263 = arith.mulf %260, %262 : vector<16x32xf32>
    %c0_94 = arith.constant 0 : index
    %c0_95 = arith.constant 0 : index
    %264 = vector.load %arg23[%c0_94, %c0_95] : memref<1x32xf32, #tpu.memory_space<vmem>>, vector<1x32xf32>
    %265 = vector.broadcast %264 : vector<1x32xf32> to vector<16x32xf32>
    %266 = arith.addf %263, %265 : vector<16x32xf32>
    %c0_96 = arith.constant 0 : index
    %c0_97 = arith.constant 0 : index
    %267 = vector.load %arg16[%c0_96, %c0_97] : memref<32x64xf32, #tpu.memory_space<vmem>>, vector<32x64xf32>
    %cst_98 = arith.constant dense<0.000000e+00> : vector<16x64xf32>
    %268 = tpu.matmul %266, %267, %cst_98 {dimension_numbers = #tpu.dot_dimension_numbers<[1], [0], [0], [1], [0, 0, 1, 1], [], []>} : vector<16x32xf32>, vector<32x64xf32>, vector<16x64xf32> -> vector<16x64xf32>
    %c0_99 = arith.constant 0 : index
    %c0_100 = arith.constant 0 : index
    %269 = vector.load %arg17[%c0_99, %c0_100] : memref<1x64xf32, #tpu.memory_space<vmem>>, vector<1x64xf32>
    %270 = vector.broadcast %269 : vector<1x64xf32> to vector<16x64xf32>
    %271 = arith.addf %268, %270 : vector<16x64xf32>
    %cst_101 = arith.constant 0.000000e+00 : f32
    %272 = vector.broadcast %cst_101 : f32 to vector<16x64xf32>
    %273 = arith.maximumf %271, %272 : vector<16x64xf32>
    %c0_102 = arith.constant 0 : index
    %c0_103 = arith.constant 0 : index
    %274 = vector.load %arg18[%c0_102, %c0_103] : memref<64x32xf32, #tpu.memory_space<vmem>>, vector<64x32xf32>
    %cst_104 = arith.constant dense<0.000000e+00> : vector<16x32xf32>
    %275 = tpu.matmul %273, %274, %cst_104 {dimension_numbers = #tpu.dot_dimension_numbers<[1], [0], [0], [1], [0, 0, 1, 1], [], []>} : vector<16x64xf32>, vector<64x32xf32>, vector<16x32xf32> -> vector<16x32xf32>
    %c0_105 = arith.constant 0 : index
    %c0_106 = arith.constant 0 : index
    %276 = vector.load %arg19[%c0_105, %c0_106] : memref<1x32xf32, #tpu.memory_space<vmem>>, vector<1x32xf32>
    %277 = vector.broadcast %276 : vector<1x32xf32> to vector<16x32xf32>
    %278 = arith.addf %275, %277 : vector<16x32xf32>
    %279 = arith.addf %266, %278 : vector<16x32xf32>
    %cst_107 = arith.constant dense<0.000000e+00> : vector<16xf32>
    %280 = vector.multi_reduction <add>, %279, %cst_107 [1] : vector<16x32xf32> to vector<16xf32>
    %281 = vector.shape_cast %280 : vector<16xf32> to vector<16x1xf32>
    %cst_108 = arith.constant 3.200000e+01 : f32
    %282 = vector.broadcast %cst_108 : f32 to vector<16x1xf32>
    %283 = arith.divf %281, %282 : vector<16x1xf32>
    %284 = vector.broadcast %283 : vector<16x1xf32> to vector<16x32xf32>
    %285 = arith.subf %279, %284 : vector<16x32xf32>
    %286 = arith.mulf %285, %285 : vector<16x32xf32>
    %cst_109 = arith.constant dense<0.000000e+00> : vector<16xf32>
    %287 = vector.multi_reduction <add>, %286, %cst_109 [1] : vector<16x32xf32> to vector<16xf32>
    %288 = vector.shape_cast %287 : vector<16xf32> to vector<16x1xf32>
    %cst_110 = arith.constant 3.200000e+01 : f32
    %289 = vector.broadcast %cst_110 : f32 to vector<16x1xf32>
    %290 = arith.divf %288, %289 : vector<16x1xf32>
    %cst_111 = arith.constant 9.99999974E-6 : f32
    %291 = vector.broadcast %cst_111 : f32 to vector<16x1xf32>
    %292 = arith.addf %290, %291 : vector<16x1xf32>
    %293 = math.rsqrt %292 : vector<16x1xf32>
    %294 = vector.broadcast %293 : vector<16x1xf32> to vector<16x32xf32>
    %295 = arith.mulf %285, %294 : vector<16x32xf32>
    %c0_112 = arith.constant 0 : index
    %c0_113 = arith.constant 0 : index
    %296 = vector.load %arg24[%c0_112, %c0_113] : memref<1x32xf32, #tpu.memory_space<vmem>>, vector<1x32xf32>
    %297 = vector.broadcast %296 : vector<1x32xf32> to vector<16x32xf32>
    %298 = arith.mulf %295, %297 : vector<16x32xf32>
    %c0_114 = arith.constant 0 : index
    %c0_115 = arith.constant 0 : index
    %299 = vector.load %arg25[%c0_114, %c0_115] : memref<1x32xf32, #tpu.memory_space<vmem>>, vector<1x32xf32>
    %300 = vector.broadcast %299 : vector<1x32xf32> to vector<16x32xf32>
    %301 = arith.addf %298, %300 : vector<16x32xf32>
    %c0_116 = arith.constant 0 : index
    %c0_117 = arith.constant 0 : index
    %302 = vector.load %arg26[%c0_116, %c0_117] : memref<16x32xf32, #tpu.memory_space<vmem>>, vector<16x32xf32>
    tpu.vector_store %arg26[%c0_116, %c0_117], %301 {strides = array<i32>} : memref<16x32xf32, #tpu.memory_space<vmem>>, vector<16x32xf32>,
    return
  }
}

</mosaic_0001>

<bundles_post_ra>
// kernel: transformer_decoder_layer.1
= control target key start
LH: loop header
LB: loop body
LE: loop exit
PB: predicated region body
PF: predicated region fallthrough
CT: control target
= control target key end

     0   :  { %vm104_vm0 = vcmask 261120   ;;  %v4696_v24 = vmov 0.0   ;;  %vm4697_vm1 = vmmov 0   ;;  %vm378_vm2 = vcmask 64512   ;;  %s4699_s27 = smov 112   ;;  %s5388_s12 = inlined_call_operand.vmem [shape: f32[32,64], index: 12, kind: input, shape index: {}]   ;;  %s5389_s1 = inlined_call_operand.vmem [shape: f32[16,32], index: 1, kind: input, shape index: {}]   ;;  %s5390_s3 = inlined_call_operand.vmem [shape: f32[16,32], index: 3, kind: input, shape index: {}]   ;;  %s5391_s0 = inlined_call_operand.vmem [shape: f32[16,32], index: 0, kind: input, shape index: {}]   ;;  %s5392_s2 = inlined_call_operand.vmem [shape: f32[16,32], index: 2, kind: input, shape index: {}]   ;;  %s5393_s14 = inlined_call_operand.vmem [shape: f32[32,64], index: 14, kind: input, shape index: {}]   ;;  %s5394_s4 = inlined_call_operand.vmem [shape: f32[32,32], index: 4, kind: input, shape index: {}]   ;;  %s5395_s13 = inlined_call_operand.vmem [shape: f32[1,64], index: 13, kind: input, shape index: {}]   ;;  %s5396_s5 = inlined_call_operand.vmem [shape: f32[1,32], index: 5, kind: input, shape index: {}]   ;;  %s5397_s15 = inlined_call_operand.vmem [shape: f32[1,64], index: 15, kind: input, shape index: {}]   ;;  %s5398_s6 = inlined_call_operand.vmem [shape: f32[32,32], index: 6, kind: input, shape index: {}]   ;;  %s5399_s7 = inlined_call_operand.vmem [shape: f32[1,32], index: 7, kind: input, shape index: {}]   ;;  %s5400_s8 = inlined_call_operand.vmem [shape: f32[32,32], index: 8, kind: input, shape index: {}]   ;;  %s5401_s20 = inlined_call_operand.vmem [shape: f32[1,32], index: 20, kind: input, shape index: {}]   ;;  %s5402_s21 = inlined_call_operand.vmem [shape: f32[1,32], index: 21, kind: input, shape index: {}]   ;;  %s5403_s9 = inlined_call_operand.vmem [shape: f32[1,32], index: 9, kind: input, shape index: {}]   ;;  %s5404_s10 = inlined_call_operand.vmem [shape: f32[32,32], index: 10, kind: input, shape index: {}]   ;;  %s5405_s11 = inlined_call_operand.vmem [shape: f32[1,32], index: 11, kind: input, shape index: {}]   ;;  %s5406_s16 = inlined_call_operand.vmem [shape: f32[32,64], index: 16, kind: input, shape index: {}]   ;;  %s5407_s18 = inlined_call_operand.vmem [shape: f32[64,32], index: 18, kind: input, shape index: {}]   ;;  %s5408_s22 = inlined_call_operand.vmem [shape: f32[1,32], index: 22, kind: input, shape index: {}]   ;;  %s5409_s23 = inlined_call_operand.vmem [shape: f32[1,32], index: 23, kind: input, shape index: {}]   ;;  %s5410_s17 = inlined_call_operand.vmem [shape: f32[1,64], index: 17, kind: input, shape index: {}]   ;;  %s5411_s19 = inlined_call_operand.vmem [shape: f32[1,32], index: 19, kind: input, shape index: {}]   ;;  %s5412_s24 = inlined_call_operand.vmem [shape: f32[1,32], index: 24, kind: input, shape index: {}]   ;;  %s5413_s25 = inlined_call_operand.vmem [shape: f32[1,32], index: 25, kind: input, shape index: {}]   ;;  %s5414_s26 = inlined_call_operand.vmem [shape: f32[16,32], index: 26, kind: output, shape index: {}]  }
   0x1   :  { %5423 = sst [smem:[#allocation2_spill]] %s5388_s12  ;;  %vm3985_vm3 = vcmask 523264  }
   0x2   :  { %5424 = sst [smem:[#allocation3_spill]] %s5389_s1  ;;  %s4704_s1 = smov 72  }
   0x3   :  { %5425 = sst [smem:[#allocation4_spill]] %s5390_s3 }
   0x4   :  { %5426 = sst [smem:[#allocation5_spill]] %s5391_s0 }
   0x5   :  { %5427 = sst [smem:[#allocation6_spill]] %s5392_s2  ;;  %s4700_s2 = smov 104  }
   0x6   :  { %5428 = sst [smem:[#allocation7_spill]] %s5393_s14 }
   0x7   :  { %5429 = sst [smem:[#allocation8_spill]] %s5394_s4 }
   0x8   :  { %5430 = sst [smem:[#allocation9_spill]] %s5395_s13 }
   0x9   :  { %5431 = sst [smem:[#allocation10_spill]] %s5396_s5 }
   0xa   :  { %5432 = sst [smem:[#allocation11_spill]] %s5397_s15 }
   0xb   :  { %5433 = sst [smem:[#allocation12_spill]] %s5398_s6 }
   0xc   :  { %s5434_s13 = sld [smem:[#allocation2_spill]] }
   0xd   :  { %s5435_s30 = sld [smem:[#allocation3_spill]] }
   0xe   :  { %s5436_s0 = sld [smem:[#allocation4_spill]] }
   0xf   :  { %s5437_s3 = sld [smem:[#allocation5_spill]] }
  0x10   :  { %s5438_s6 = sld [smem:[#allocation6_spill]] }
  0x11   :  { %s5439_s4 = sld [smem:[#allocation7_spill]] }
  0x12   :  { %v96_v0 = vld [vmem:[%s5434_s13 + $0x18] sm:$0xff]  ;;  %v95_v1 = vld [vmem:[%s5434_s13 + $0x10] sm:$0xff]  ;;  %v94_v2 = vld [vmem:[%s5434_s13 + $0x8] sm:$0xff]  ;;  %s5440_s28 = sld [smem:[#allocation8_spill]] }
  0x13   :  { %4337 = vmatprep.subr.mxu0 %v96_v0  ;;  %v85_v3 = vld [vmem:[%s5435_s30] sm:$0xff]  ;;  %v86_v4 = vld [vmem:[%s5435_s30 + $0x8] sm:$0xff]  ;;  %s5441_s29 = sld [smem:[#allocation9_spill]] }
  0x14   :  { %4338 = vmatpush3.msra.mxu0 %v96_v0  ;;  %v89_v5 = vld [vmem:[%s5436_s0] sm:$0xff]  ;;  %v90_v6 = vld [vmem:[%s5436_s0 + $0x8] sm:$0xff]  ;;  %4356 = vmatprep.mubr.msk.f32.mxu1 %vm104_vm0, %v85_v3  ;;  %s5442_s14 = sld [smem:[#allocation10_spill]] }
  0x15   :  { %4339 = vmatprep.subr.mxu0 %v95_v1  ;;  %v91_v7 = vadd.f32 %v89_v5, %v85_v3  ;;  %v93_v8 = vld [vmem:[%s5434_s13] sm:$0xff]  ;;  %v92_v11 = vadd.f32 %v90_v6, %v86_v4  ;;  %v4900_v19 = vld [vmem:[%s5437_s3 + $0x8] sm:$0xff]  ;;  %s5443_s13 = sld [smem:[#allocation11_spill]] }
  0x16   :  { %4340 = vmatpush3.msra.mxu0 %v95_v1  ;;  %v4868_v9 = vld [vmem:[%s5437_s3] sm:$0xff]  ;;  %v4905_v20 = vld [vmem:[%s5438_s6 + $0x8] sm:$0xff]  ;;  %s5444_s3 = sld [smem:[#allocation12_spill]] }
  0x17   :  { %v4873_v10 = vld [vmem:[%s5438_s6] sm:$0xff]  ;;  %4341 = vmatprep.subr.mxu0 %v94_v2  ;;  %4345 = vmatprep.mubr.msk.f32.mxu0 %vm104_vm0, %v91_v7  ;;  %v189_v12 = vld [vmem:[%s5439_s4 + $0x18] sm:$0xff]  ;;  %v188_v13 = vld [vmem:[%s5439_s4 + $0x10] sm:$0xff]  ;;  %v279_v22 = vadd.f32 %v4905_v20, %v4900_v19 }
  0x18   :  { %4342 = vmatpush3.msra.mxu0 %v94_v2  ;;  %v283_v14 = vld [vmem:[%s5440_s28 + $0x18] sm:$0xff]  ;;  %v278_v15 = vadd.f32 %v4873_v10, %v4868_v9  ;;  %4348 = vmatprep.subr.mxu1 %v189_v12  ;;  %v282_v16 = vld [vmem:[%s5440_s28 + $0x10] sm:$0xff]  ;;  %v187_v17 = vld [vmem:[%s5439_s4 + $0x8] sm:$0xff] }
  0x19   :  { %4343 = vmatprep.subr.mxu0 %v93_v8  ;;  %4349 = vmatpush3.msra.mxu1 %v189_v12  ;;  %v281_v18 = vld [vmem:[%s5440_s28 + $0x8] sm:$0xff]  ;;  %v280_v21 = vld [vmem:[%s5440_s28] sm:$0xff] }
  0x1a   :  { %4344 = vmatpush3.msra.mxu0 %v93_v8  ;;  %4350 = vmatprep.subr.mxu1 %v188_v13  ;;  %v186_v23 = vld [vmem:[%s5439_s4] sm:$0xff]  ;;  %s4698_s4 = smov 120  }
  0x1b   :  { %4346 = vmatmul.mubr.msk.f32.vlgmr.msra.gmra.mxu0 %vm104_vm0, %v92_v11  ;;  %4359 = vmatprep.subr.mxu0 %v283_v14  ;;  %v4119_v25 = vld [vmem:[%s5441_s29] ss:$0 sm:$0xff] }
  0x1c   :  { %4360 = vmatpush3.msra.mxu0 %v283_v14  ;;  %4367 = vmatprep.mubr.msk.f32.mxu0 %vm104_vm0, %v278_v15  ;;  %v4125_v30 = vld [vmem:[%s5442_s14] ss:$0 sm:$0xff] }
  0x1d   :  { %4361 = vmatprep.subr.mxu0 %v282_v16  ;;  %4351 = vmatpush3.msra.mxu1 %v188_v13  ;;  %v4122_v37 = vld [vmem:[%s5443_s13] ss:$0 sm:$0xff] }
  0x1e   :  { %4362 = vmatpush3.msra.mxu0 %v282_v16  ;;  %4352 = vmatprep.subr.mxu1 %v187_v17 }
  0x1f   :  { %4363 = vmatprep.subr.mxu0 %v281_v18  ;;  %4353 = vmatpush3.msra.mxu1 %v187_v17 }
  0x20   :  { %4364 = vmatpush3.msra.mxu0 %v281_v18  ;;  %4354 = vmatprep.subr.mxu1 %v186_v23 }
  0x21   :  { %4365 = vmatprep.subr.mxu0 %v280_v21  ;;  %4355 = vmatpush3.msra.mxu1 %v186_v23 }
  0x22   :  { %4366 = vmatpush3.msra.mxu0 %v280_v21  ;;  %4375 = vmatprep.subr.mxu1 %v4696_v24 }
  0x23   :  { %4368 = vmatmul.mubr.msk.f32.vlgmr.msra.gmra.mxu0 %vm104_vm0, %v279_v22  ;;  %4357 = vmatmul.mubr.msk.f32.vlgmr.msra.gmra.mxu1 %vm104_vm0, %v86_v4 }
  0x24   :  { %4370 = vmatprep.subr.mxu0 %v4696_v24  ;;  %4377 = vmatprep.mubr.msk.f32.mxu1 %vm4697_vm1, %v4696_v24 }
  0x25   :  { %4372 = vmatprep.mubr.msk.f32.mxu0 %vm4697_vm1, %v4696_v24 }
  0xdb   :  { %v4347_v26 = vpop.f32.mrf.mxu0 }
  0xdc   :  { %v4927_v27 = vadd.f32 %v4347_v26, %v4119_v25 }
  0xdd   :  { %v177_v28 = vpop.f32.mrf.mxu0 }
  0xde   :  { %v4929_v29 = vadd.f32 %v4119_v25, %v177_v28  ;;  %779 = vrot.lane.b32.xlu1 %v4927_v27, %s4698_s4  ;;  %4376 = vmatpush3.xpose.msk.msra.mxu1 %vm378_vm2, %v4927_v27 }
  0xdf   :  { %4385 = vmatprep.subr.mxu1 %v4696_v24 }
  0xe0   :  { %4371 = vmatpush3.xpose.msk.msra.mxu0 %vm378_vm2, %v4929_v29 }
  0xe1   :  { %4380 = vmatprep.subr.mxu0 %v4696_v24 }
  0xe3   :  { %v4369_v31 = vpop.f32.mrf.mxu0  ;;  %v4358_v38 = vpop.f32.mrf.mxu1 }
  0xe4   :  { %v369_v32 = vadd.f32 %v4369_v31, %v4125_v30  ;;  %v4959_v39 = vadd.f32 %v4358_v38, %v4122_v37 }
  0xe5   :  { %v363_v33 = vpop.f32.mrf.mxu0  ;;  %v269_v40 = vpop.f32.mrf.mxu1 }
  0xe6   :  { %v4942_v34 = vmul.f32 0.35355338, %v369_v32  ;;  %v364_v35 = vadd.f32 %v4125_v30, %v363_v33  ;;  %v4961_v41 = vadd.f32 %v4122_v37, %v269_v40  ;;  %v374_v32 = vld [vmem:[%s5444_s3] sm:$0xff] }
  0xe8   :  { %v4944_v36 = vmul.f32 0.35355338, %v364_v35  ;;  %4378 = vmatmul.mubr.msk.f32.vlgmr.msra.gmra.mxu1 %vm378_vm2, %v4942_v34 }
  0xe9   :  { %4387 = vmatprep.mubr.msk.f32.mxu1 %vm4697_vm1, %v4696_v24  ;;  %4386 = vmatpush3.msra.mxu1 %v4959_v39 }
  0xea   :  { %699 = vrot.lane.b32.xlu1 %v4944_v36, %s4698_s4  ;;  %4373 = vmatmul.mubr.msk.f32.vlgmr.msra.gmra.mxu0 %vm378_vm2, %v4944_v36 }
  0xeb   :  { %4382 = vmatprep.mubr.msk.f32.mxu0 %vm4697_vm1, %v4696_v24  ;;  %4395 = vmatprep.subr.mxu1 %v4696_v24 }
  0xec   :  { %4381 = vmatpush3.msra.mxu0 %v4961_v41 }
  0xed   :  { %4390 = vmatprep.subr.mxu0 %v4696_v24 }
 0x150   :  { %v780_v58 = vpop.permute.xlu1 %779 }
 0x15c   :  { %v700_v59 = vpop.permute.xlu1 %699 }
 0x1a8   :  { %v527_v42 = vpop.f32.mrf.mxu1 }
 0x1a9   :  { %v534_v47 = vsel %vm378_vm2, %v527_v42, -inf }
 0x1aa   :  { %v451_v43 = vpop.f32.mrf.mxu0  ;;  %v4379_v44 = vpop.f32.mrf.mxu1 }
 0x1ab   :  { %v531_v45 = vsel %vm378_vm2, %v451_v43, -inf }
 0x1ac   :  { %532 = vmax.xlane.f32.xlu0 %v531_v45  ;;  %v4374_v46 = vpop.f32.mrf.mxu0 }
 0x1b0   :  { %535 = vmax.xlane.f32.xlu0 %v534_v47  ;;  %v375_v47 = vld [vmem:[%s5444_s3 + $0x8] sm:$0xff] }
 0x1c6   :  { %701 = vrot.lane.b32.xlu0 %v4929_v29, %s4698_s4 }
 0x235   :  { %v533_v48 = vpop.xlane.xlu0 %532 }
 0x236   :  { %v537_v49 = vsub.f32 %v451_v43, %v533_v48 }
 0x238   :  { %v539_v52 = vmul.f32 1.442695, %v537_v49 }
 0x239   :  { %v536_v50 = vpop.xlane.xlu0 %535 }
 0x23a   :  { %v538_v51 = vsub.f32 %v527_v42, %v536_v50 }
 0x23c   :  { %v541_v53 = vmul.f32 1.442695, %v538_v51 }
 0x23d   :  { %v702_v3 = vpop.permute.xlu0 %701 }
 0x23e   :  { %4620 = vpow2.f32 %v541_v53 }
 0x23f   :  { %4622 = vpow2.f32 %v539_v52 }
 0x24b   :  { %v4621_v54 = vpop.eup %4620 }
 0x24c   :  { %v546_v55 = vsel %vm378_vm2, %v4621_v54, 0.0  ;;  %v4623_v56 = vpop.eup %4622 }
 0x24d   :  { %547 = vadd.xlane.f32.xlu1 %v546_v55  ;;  %v543_v57 = vsel %vm378_vm2, %v4623_v56, 0.0 }
 0x251   :  { %544 = vadd.xlane.f32.xlu1 %v543_v57 }
 0x262   :  { %777 = vrot.lane.b32.xlu1 %v4942_v34, %s4698_s4 }
 0x2d6   :  { %v548_v60 = vpop.xlane.xlu1 %547 }
 0x2d7   :  { %4624 = vrcp.f32 %v548_v60 }
 0x2da   :  { %v545_v61 = vpop.xlane.xlu1 %544 }
 0x2db   :  { %4626 = vrcp.f32 %v545_v61 }
 0x2de   :  { %v778_v2 = vpop.permute.xlu1 %777 }
 0x2e4   :  { %v4625_v62 = vpop.eup %4624 }
 0x2e5   :  { %v552_v63 = vmul.f32 %v4625_v62, %v4621_v54 }
 0x2e7   :  { %4388 = vmatmul.mubr.msk.f32.vlgmr.msra.gmra.mxu1 %vm378_vm2, %v552_v63 }
 0x2e8   :  { %v4627_v0 = vpop.eup %4626  ;;  %4396 = vmatpush3.xpose.msk.msra.mxu1 %vm378_vm2, %v780_v58  ;;  %4397 = vmatprep.mubr.msk.f32.mxu1 %vm4697_vm1, %v4696_v24 }
 0x2e9   :  { %v551_v1 = vmul.f32 %v4627_v0, %v4623_v56  ;;  %4405 = vmatprep.subr.mxu1 %v4696_v24 }
 0x2eb   :  { %4383 = vmatmul.mubr.msk.f32.vlgmr.msra.gmra.mxu0 %vm378_vm2, %v551_v1  ;;  %4398 = vmatmul.mubr.msk.f32.vlgmr.msra.gmra.mxu1 %vm378_vm2, %v778_v2 }
 0x2ec   :  { %4391 = vmatpush3.xpose.msk.msra.mxu0 %vm378_vm2, %v702_v3  ;;  %4392 = vmatprep.mubr.msk.f32.mxu0 %vm4697_vm1, %v4696_v24 }
 0x2ed   :  { %4400 = vmatprep.subr.mxu0 %v4696_v24  ;;  %4407 = vmatprep.mubr.msk.f32.mxu1 %vm4697_vm1, %v4696_v24 }
 0x2ef   :  { %4393 = vmatmul.mubr.msk.f32.vlgmr.msra.gmra.mxu0 %vm378_vm2, %v700_v59 }
 0x2f0   :  { %4402 = vmatprep.mubr.msk.f32.mxu0 %vm4697_vm1, %v4696_v24 }
 0x3a7   :  { %v695_v4 = vpop.f32.mrf.mxu1 }
 0x3a9   :  { %v4389_v5 = vpop.f32.mrf.mxu1 }
 0x3ab   :  { %v622_v6 = vpop.f32.mrf.mxu0  ;;  %v851_v7 = vpop.f32.mrf.mxu1 }
 0x3ac   :  { %v858_v8 = vsel %vm378_vm2, %v851_v7, -inf }
 0x3ad   :  { %859 = vmax.xlane.f32.xlu1 %v858_v8  ;;  %v4384_v11 = vpop.f32.mrf.mxu0  ;;  %v4399_v12 = vpop.f32.mrf.mxu1 }
 0x3af   :  { %v773_v13 = vpop.f32.mrf.mxu0 }
 0x3b0   :  { %v855_v14 = vsel %vm378_vm2, %v773_v13, -inf }
 0x3b1   :  { %856 = vmax.xlane.f32.xlu0 %v855_v14  ;;  %v4394_v15 = vpop.f32.mrf.mxu0 }
 0x3be   :  { %955 = vrot.lane.b32.xlu1 %v4959_v39, %s4698_s4 }
 0x3c2   :  { %1195 = vrot.lane.b32.xlu1 %v4929_v29, %s4699_s27 }
 0x3c6   :  { %1273 = vrot.lane.b32.xlu1 %v4927_v27, %s4699_s27 }
 0x3ca   :  { %1271 = vrot.lane.b32.xlu1 %v4942_v34, %s4699_s27 }
 0x436   :  { %v860_v16 = vpop.xlane.xlu1 %859 }
 0x437   :  { %v862_v17 = vsub.f32 %v851_v7, %v860_v16 }
 0x439   :  { %v865_v18 = vmul.f32 1.442695, %v862_v17 }
 0x43a   :  { %v956_v21 = vpop.permute.xlu1 %955  ;;  %v857_v22 = vpop.xlane.xlu0 %856 }
 0x43b   :  { %4628 = vpow2.f32 %v865_v18  ;;  %v861_v23 = vsub.f32 %v773_v13, %v857_v22  ;;  %4406 = vmatpush3.msra.mxu1 %v956_v21 }
 0x43c   :  { %4415 = vmatprep.subr.mxu1 %v374_v32 }
 0x43d   :  { %v863_v25 = vmul.f32 1.442695, %v861_v23 }
 0x43e   :  { %v1196_v38 = vpop.permute.xlu1 %1195 }
 0x43f   :  { %4630 = vpow2.f32 %v863_v25 }
 0x442   :  { %v1274_v44 = vpop.permute.xlu1 %1273 }
 0x446   :  { %v1272_v46 = vpop.permute.xlu1 %1271 }
 0x448   :  { %v4629_v26 = vpop.eup %4628 }
 0x449   :  { %v870_v28 = vsel %vm378_vm2, %v4629_v26, 0.0 }
 0x44a   :  { %871 = vadd.xlane.f32.xlu0 %v870_v28 }
 0x44c   :  { %v4631_v30 = vpop.eup %4630 }
 0x44d   :  { %v867_v31 = vsel %vm378_vm2, %v4631_v30, 0.0 }
 0x44e   :  { %868 = vadd.xlane.f32.xlu0 %v867_v31 }
 0x464   :  { %878 = vrot.lane.b32.xlu0 %v4961_v41, %s4698_s4 }
 0x468   :  { %1193 = vrot.lane.b32.xlu0 %v4944_v36, %s4699_s27 }
 0x4d3   :  { %v872_v33 = vpop.xlane.xlu0 %871 }
 0x4d4   :  { %4632 = vrcp.f32 %v872_v33 }
 0x4d7   :  { %v869_v35 = vpop.xlane.xlu0 %868 }
 0x4d8   :  { %4634 = vrcp.f32 %v869_v35 }
 0x4db   :  { %v879_v37 = vpop.permute.xlu0 %878 }
 0x4dc   :  { %4401 = vmatpush3.msra.mxu0 %v879_v37 }
 0x4dd   :  { %4410 = vmatprep.subr.mxu0 %v375_v47 }
 0x4df   :  { %v1194_v55 = vpop.permute.xlu0 %1193 }
 0x4e1   :  { %v4633_v40 = vpop.eup %4632 }
 0x4e2   :  { %v876_v42 = vmul.f32 %v4633_v40, %v4629_v26 }
 0x4e4   :  { %4408 = vmatmul.mubr.msk.f32.vlgmr.msra.gmra.mxu1 %vm378_vm2, %v876_v42 }
 0x4e5   :  { %v4635_v43 = vpop.eup %4634  ;;  %4417 = vmatprep.mubr.msk.f32.mxu1 %vm378_vm2, %v622_v6  ;;  %4416 = vmatpush3.msra.mxu1 %v374_v32 }
 0x4e6   :  { %4425 = vmatprep.subr.mxu1 %v4696_v24  ;;  %v875_v45 = vmul.f32 %v4635_v43, %v4631_v30 }
 0x4e8   :  { %4403 = vmatmul.mubr.msk.f32.vlgmr.msra.gmra.mxu0 %vm378_vm2, %v875_v45  ;;  %4418 = vmatmul.mubr.msk.f32.vlgmr.msra.gmra.mxu1 %vm378_vm2, %v695_v4 }
 0x4e9   :  { %4426 = vmatpush3.xpose.msk.msra.mxu1 %vm378_vm2, %v1274_v44  ;;  %4427 = vmatprep.mubr.msk.f32.mxu1 %vm4697_vm1, %v4696_v24 }
 0x4ea   :  { %4435 = vmatprep.subr.mxu1 %v4696_v24  ;;  %4411 = vmatpush3.msra.mxu0 %v375_v47 }
 0x4eb   :  { %4420 = vmatprep.subr.mxu0 %v4696_v24 }
 0x4ec   :  { %4428 = vmatmul.mubr.msk.f32.vlgmr.msra.gmra.mxu1 %vm378_vm2, %v1272_v46 }
 0x4ed   :  { %4437 = vmatprep.mubr.msk.f32.mxu1 %vm4697_vm1, %v4696_v24 }
 0x5a4   :  { %v1027_v48 = vpop.f32.mrf.mxu1 }
 0x5a6   :  { %v4409_v49 = vpop.f32.mrf.mxu1 }
 0x5a8   :  { %v950_v50 = vpop.f32.mrf.mxu0  ;;  %v5026_v51 = vpop.f32.mrf.mxu1 }
 0x5a9   :  { %4412 = vmatprep.mubr.msk.f32.mxu0 %vm378_vm2, %v950_v50 }
 0x5aa   :  { %v4404_v52 = vpop.f32.mrf.mxu0  ;;  %4413 = vmatmul.mubr.msk.f32.vlgmr.msra.gmra.mxu0 %vm378_vm2, %v1027_v48  ;;  %v5030_v53 = vpop.f32.mrf.mxu1 }
 0x5ab   :  { %4421 = vmatpush3.xpose.msk.msra.mxu0 %vm378_vm2, %v1196_v38  ;;  %4422 = vmatprep.mubr.msk.f32.mxu0 %vm4697_vm1, %v4696_v24 }
 0x5ac   :  { %v1345_v54 = vpop.f32.mrf.mxu1  ;;  %4430 = vmatprep.subr.mxu0 %v4696_v24 }
 0x5ad   :  { %v1352_v56 = vsel %vm378_vm2, %v1345_v54, -inf }
 0x5ae   :  { %1353 = vmax.xlane.f32.xlu1 %v1352_v56  ;;  %4423 = vmatmul.mubr.msk.f32.vlgmr.msra.gmra.mxu0 %vm378_vm2, %v1194_v55  ;;  %v4429_v57 = vpop.f32.mrf.mxu1 }
 0x5af   :  { %4432 = vmatprep.mubr.msk.f32.mxu0 %vm4697_vm1, %v4696_v24 }
 0x5bf   :  { %1447 = vrot.lane.b32.xlu1 %v4959_v39, %s4699_s27 }
 0x5c3   :  { %1608 = vrot.lane.b32.xlu1 %v4929_v29, %s4700_s2 }
 0x5c7   :  { %1686 = vrot.lane.b32.xlu1 %v4927_v27, %s4700_s2 }
 0x5cb   :  { %1684 = vrot.lane.b32.xlu1 %v4942_v34, %s4700_s2 }
 0x637   :  { %v1354_v58 = vpop.xlane.xlu1 %1353 }
 0x638   :  { %v1356_v60 = vsub.f32 %v1345_v54, %v1354_v58 }
 0x63a   :  { %v1359_v61 = vmul.f32 1.442695, %v1356_v60 }
 0x63b   :  { %v1448_v59 = vpop.permute.xlu1 %1447 }
 0x63c   :  { %4436 = vmatpush3.msra.mxu1 %v1448_v59  ;;  %4636 = vpow2.f32 %v1359_v61 }
 0x63d   :  { %4445 = vmatprep.subr.mxu1 %v4696_v24 }
 0x63f   :  { %v1609_v14 = vpop.permute.xlu1 %1608 }
 0x643   :  { %v1687_v30 = vpop.permute.xlu1 %1686 }
 0x647   :  { %v1685_v33 = vpop.permute.xlu1 %1684 }
 0x649   :  { %v4637_v2 = vpop.eup %4636 }
 0x64a   :  { %v1364_v34 = vsel %vm378_vm2, %v4637_v2, 0.0 }
 0x66a   :  { %v5049_v62 = vpop.f32.mrf.mxu0 }
 0x66b   :  { %v1190_v43 = vadd.f32 %v5026_v51, %v5049_v62 }
 0x66c   :  { %v5051_v63 = vpop.f32.mrf.mxu0 }
 0x66d   :  { %v1185_v45 = vadd.f32 %v5030_v53, %v5051_v63 }
 0x66e   :  { %v1267_v0 = vpop.f32.mrf.mxu0 }
 0x66f   :  { %v1349_v1 = vsel %vm378_vm2, %v1267_v0, -inf }
 0x670   :  { %1350 = vmax.xlane.f32.xlu0 %v1349_v1  ;;  %v4424_v3 = vpop.f32.mrf.mxu0  ;;  %v377_v1 = vld [vmem:[%s5444_s3 + $0x18] sm:$0xff] }
 0x674   :  { %1365 = vadd.xlane.f32.xlu0 %v1364_v34 }
 0x6f9   :  { %v1351_v4 = vpop.xlane.xlu0 %1350 }
 0x6fa   :  { %v1355_v5 = vsub.f32 %v1267_v0, %v1351_v4 }
 0x6fc   :  { %v1357_v6 = vmul.f32 1.442695, %v1355_v5 }
 0x6fd   :  { %v1366_v7 = vpop.xlane.xlu0 %1365 }
 0x6fe   :  { %4638 = vpow2.f32 %v1357_v6  ;;  %v4160_v6 = vld [vmem:[%s5399_s7] ss:$0 sm:$0xff]  ;;  %s4701_s7 = smov 96  }
 0x6ff   :  { %4640 = vrcp.f32 %v1366_v7 }
 0x70b   :  { %v4639_v8 = vpop.eup %4638 }
 0x70c   :  { %v4641_v11 = vpop.eup %4640  ;;  %v1361_v12 = vsel %vm378_vm2, %v4639_v8, 0.0 }
 0x70d   :  { %1362 = vadd.xlane.f32.xlu0 %v1361_v12  ;;  %v1370_v13 = vmul.f32 %v4641_v11, %v4637_v2 }
 0x70f   :  { %4438 = vmatmul.mubr.msk.f32.vlgmr.msra.gmra.mxu1 %vm378_vm2, %v1370_v13 }
 0x710   :  { %4446 = vmatpush3.xpose.msk.msra.mxu1 %vm378_vm2, %v1609_v14  ;;  %4447 = vmatprep.mubr.msk.f32.mxu1 %vm4697_vm1, %v4696_v24 }
 0x711   :  { %4455 = vmatprep.subr.mxu1 %v4696_v24 }
 0x723   :  { %1371 = vrot.lane.b32.xlu0 %v4961_v41, %s4699_s27 }
 0x727   :  { %1606 = vrot.lane.b32.xlu0 %v4944_v36, %s4700_s2  ;;  %v376_v36 = vld [vmem:[%s5444_s3 + $0x10] sm:$0xff] }
 0x796   :  { %v1363_v15 = vpop.xlane.xlu0 %1362 }
 0x797   :  { %4642 = vrcp.f32 %v1363_v15 }
 0x79a   :  { %v1372_v16 = vpop.permute.xlu0 %1371 }
 0x79b   :  { %4431 = vmatpush3.msra.mxu0 %v1372_v16 }
 0x79c   :  { %4440 = vmatprep.subr.mxu0 %v376_v36 }
 0x79e   :  { %v1607_v17 = vpop.permute.xlu0 %1606 }
 0x79f   :  { %4448 = vmatmul.mubr.msk.f32.vlgmr.msra.gmra.mxu1 %vm378_vm2, %v1607_v17 }
 0x7a0   :  { %4457 = vmatprep.mubr.msk.f32.mxu1 %vm4697_vm1, %v4696_v24 }
 0x7a4   :  { %v4643_v18 = vpop.eup %4642 }
 0x7a5   :  { %v1369_v21 = vmul.f32 %v4643_v18, %v4639_v8 }
 0x7a7   :  { %4433 = vmatmul.mubr.msk.f32.vlgmr.msra.gmra.mxu0 %vm378_vm2, %v1369_v21 }
 0x7a8   :  { %4441 = vmatpush3.msra.mxu0 %v376_v36 }
 0x7a9   :  { %4450 = vmatprep.subr.mxu0 %v4696_v24 }
 0x7cf   :  { %v1519_v22 = vpop.f32.mrf.mxu1 }
 0x7d1   :  { %v4439_v23 = vpop.f32.mrf.mxu1 }
 0x85f   :  { %v1680_v25 = vpop.f32.mrf.mxu1 }
 0x860   :  { %v1762_v26 = vsel %vm378_vm2, %v1680_v25, -inf }
 0x861   :  { %1763 = vmax.xlane.f32.xlu0 %v1762_v26  ;;  %v4449_v28 = vpop.f32.mrf.mxu1 }
 0x867   :  { %v1443_v31 = vpop.f32.mrf.mxu0 }
 0x868   :  { %4442 = vmatprep.mubr.msk.f32.mxu0 %vm378_vm2, %v1443_v31  ;;  %v2079_v31 = vld [vmem:[%s5400_s8 + $0x10] sm:$0xff] }
 0x869   :  { %v4434_v32 = vpop.f32.mrf.mxu0  ;;  %4443 = vmatmul.mubr.msk.f32.vlgmr.msra.gmra.mxu0 %vm378_vm2, %v1519_v22 }
 0x86a   :  { %4451 = vmatpush3.xpose.msk.msra.mxu0 %vm378_vm2, %v1687_v30  ;;  %4452 = vmatprep.mubr.msk.f32.mxu0 %vm4697_vm1, %v4696_v24  ;;  %v2078_v32 = vld [vmem:[%s5400_s8 + $0x8] sm:$0xff] }
 0x86b   :  { %4460 = vmatprep.subr.mxu0 %v4696_v24 }
 0x86d   :  { %4453 = vmatmul.mubr.msk.f32.vlgmr.msra.gmra.mxu0 %vm378_vm2, %v1685_v33  ;;  %v2077_v33 = vld [vmem:[%s5400_s8] sm:$0xff] }
 0x86e   :  { %4462 = vmatprep.mubr.msk.f32.mxu0 %vm4697_vm1, %v4696_v24 }
 0x8ea   :  { %v1764_v35 = vpop.xlane.xlu0 %1763 }
 0x8eb   :  { %v1768_v37 = vsub.f32 %v1680_v25, %v1764_v35 }
 0x8ed   :  { %v1770_v38 = vmul.f32 1.442695, %v1768_v37 }
 0x8ef   :  { %4644 = vpow2.f32 %v1770_v38 }
 0x8fc   :  { %v4645_v40 = vpop.eup %4644 }
 0x8fd   :  { %v1774_v42 = vsel %vm378_vm2, %v4645_v40, 0.0 }
 0x8fe   :  { %1775 = vadd.xlane.f32.xlu0 %v1774_v42 }
 0x929   :  { %v4444_v44 = vpop.f32.mrf.mxu0 }
 0x92a   :  { %v1605_v46 = vadd.f32 %v4444_v44, %v1190_v43 }
 0x92b   :  { %v1595_v47 = vpop.f32.mrf.mxu0 }
 0x92c   :  { %v1604_v48 = vadd.f32 %v1595_v47, %v1185_v45 }
 0x92d   :  { %v1758_v49 = vpop.f32.mrf.mxu0 }
 0x92e   :  { %v1765_v50 = vsel %vm378_vm2, %v1758_v49, -inf }
 0x92f   :  { %1766 = vmax.xlane.f32.xlu1 %v1765_v50  ;;  %v4454_v52 = vpop.f32.mrf.mxu0 }
 0x930   :  { %v4162_v52 = vld [vmem:[%s5402_s21] ss:$0 sm:$0xff] }
 0x940   :  { %1860 = vrot.lane.b32.xlu1 %v4959_v39, %s4700_s2 }
 0x987   :  { %v1776_v58 = vpop.xlane.xlu0 %1775 }
 0x9b8   :  { %v1767_v54 = vpop.xlane.xlu1 %1766 }
 0x9b9   :  { %v1769_v55 = vsub.f32 %v1758_v49, %v1767_v54 }
 0x9bb   :  { %v1772_v56 = vmul.f32 1.442695, %v1769_v55 }
 0x9bc   :  { %v1861_v57 = vpop.permute.xlu1 %1860 }
 0x9bd   :  { %4646 = vpow2.f32 %v1772_v56  ;;  %4461 = vmatpush3.msra.mxu0 %v1861_v57 }
 0x9be   :  { %4648 = vrcp.f32 %v1776_v58  ;;  %v4163_v58 = vld [vmem:[%s5403_s9] ss:$0 sm:$0xff]  ;;  %s4702_s9 = smov 88  }
 0x9ca   :  { %v4647_v51 = vpop.eup %4646 }
 0x9cb   :  { %v1777_v53 = vsel %vm378_vm2, %v4647_v51, 0.0  ;;  %v4649_v60 = vpop.eup %4648 }
 0x9cc   :  { %1778 = vadd.xlane.f32.xlu0 %v1777_v53  ;;  %v1782_v62 = vmul.f32 %v4649_v60, %v4645_v40 }
 0x9e2   :  { %1784 = vrot.lane.b32.xlu0 %v4961_v41, %s4700_s2 }
 0xa55   :  { %v1779_v59 = vpop.xlane.xlu0 %1778 }
 0xa56   :  { %4650 = vrcp.f32 %v1779_v59 }
 0xa59   :  { %v1785_v61 = vpop.permute.xlu0 %1784 }
 0xa5a   :  { %4456 = vmatpush3.msra.mxu1 %v1785_v61 }
 0xa5b   :  { %4458 = vmatmul.mubr.msk.f32.vlgmr.msra.gmra.mxu1 %vm378_vm2, %v1782_v62  ;;  %4465 = vmatprep.subr.mxu1 %v377_v1 }
 0xa5c   :  { %4466 = vmatpush3.msra.mxu1 %v377_v1 }
 0xa5d   :  { %4481 = vmatprep.subr.mxu1 %v4696_v24 }
 0xa63   :  { %v4651_v63 = vpop.eup %4650 }
 0xa64   :  { %v1783_v0 = vmul.f32 %v4651_v63, %v4647_v51 }
 0xa66   :  { %4463 = vmatmul.mubr.msk.f32.vlgmr.msra.gmra.mxu0 %vm378_vm2, %v1783_v0 }
 0xb1b   :  { %v1856_v2 = vpop.f32.mrf.mxu1 }
 0xb1c   :  { %4467 = vmatprep.mubr.msk.f32.mxu1 %vm378_vm2, %v1856_v2 }
 0xb1d   :  { %v4459_v3 = vpop.f32.mrf.mxu1 }
 0xb26   :  { %v1932_v34 = vpop.f32.mrf.mxu0 }
 0xb27   :  { %4468 = vmatmul.mubr.msk.f32.vlgmr.msra.gmra.mxu1 %vm378_vm2, %v1932_v34 }
 0xb28   :  { %v4464_v4 = vpop.f32.mrf.mxu0  ;;  %4483 = vmatprep.mubr.msk.f32.mxu1 %vm4697_vm1, %v4696_v24 }
 0xbe7   :  { %v4469_v5 = vpop.f32.mrf.mxu1 }
 0xbe8   :  { %v2018_v7 = vadd.f32 %v4469_v5, %v1605_v46  ;;  %v4161_v46 = vld [vmem:[%s5401_s20] ss:$0 sm:$0xff] }
 0xbe9   :  { %v2008_v8 = vpop.f32.mrf.mxu1 }
 0xbea   :  { %v2027_v11 = vadd.f32 %v4160_v6, %v2018_v7  ;;  %v2017_v12 = vadd.f32 %v2008_v8, %v1604_v48 }
 0xbec   :  { %v2026_v13 = vadd.f32 %v4160_v6, %v2017_v12  ;;  %v2029_v14 = vadd.f32 %v2027_v11, %v4900_v19 }
 0xbee   :  { %v2033_v15 = vsel %vm104_vm0, %v2029_v14, 0.0  ;;  %v2028_v16 = vadd.f32 %v2026_v13, %v4868_v9  ;;  %v2080_v9 = vld [vmem:[%s5400_s8 + $0x18] sm:$0xff] }
 0xbef   :  { %2034 = vadd.xlane.f32.xlu0 %v2033_v15  ;;  %4470 = vmatprep.subr.mxu0 %v2080_v9 }
 0xbf0   :  { %v2030_v17 = vsel %vm104_vm0, %v2028_v16, 0.0  ;;  %4471 = vmatpush3.msra.mxu0 %v2080_v9 }
 0xbf1   :  { %2031 = vadd.xlane.f32.xlu1 %v2030_v17  ;;  %4472 = vmatprep.subr.mxu0 %v2079_v31 }
 0xbf2   :  { %4473 = vmatpush3.msra.mxu0 %v2079_v31 }
 0xbf3   :  { %4474 = vmatprep.subr.mxu0 %v2078_v32 }
 0xbf4   :  { %4475 = vmatpush3.msra.mxu0 %v2078_v32 }
 0xbf5   :  { %4476 = vmatprep.subr.mxu0 %v2077_v33 }
 0xbf6   :  { %4477 = vmatpush3.msra.mxu0 %v2077_v33 }
 0xbf7   :  { %4491 = vmatprep.subr.mxu0 %v4696_v24 }
 0xc78   :  { %v2035_v18 = vpop.xlane.xlu0 %2034 }
 0xc79   :  { %v2038_v21 = vmul.f32 0.03125, %v2035_v18 }
 0xc7a   :  { %v2032_v22 = vpop.xlane.xlu1 %2031 }
 0xc7b   :  { %v2040_v23 = vsub.f32 %v2029_v14, %v2038_v21  ;;  %v2037_v36 = vmul.f32 0.03125, %v2032_v22 }
 0xc7d   :  { %v2039_v25 = vsub.f32 %v2028_v16, %v2037_v36  ;;  %v2042_v26 = vmul.f32 %v2040_v23, %v2040_v23 }
 0xc7f   :  { %v2046_v28 = vsel %vm104_vm0, %v2042_v26, 0.0  ;;  %v2041_v30 = vmul.f32 %v2039_v25, %v2039_v25 }
 0xc80   :  { %2047 = vadd.xlane.f32.xlu1 %v2046_v28 }
 0xc81   :  { %v2043_v19 = vsel %vm104_vm0, %v2041_v30, 0.0 }
 0xc82   :  { %2044 = vadd.xlane.f32.xlu0 %v2043_v19 }
 0xc91   :  { %2252 = vrot.lane.b32.xlu1 %v4927_v27, %s4701_s7 }
 0xc98   :  { %2175 = vrot.lane.b32.xlu0 %v4929_v29, %s4701_s7 }
 0xd09   :  { %v2048_v35 = vpop.xlane.xlu1 %2047 }
 0xd0a   :  { %v2050_v37 = vmul.f32 0.03125, %v2048_v35 }
 0xd0b   :  { %v2045_v38 = vpop.xlane.xlu0 %2044 }
 0xd0c   :  { %v2052_v40 = vadd.f32 1e-05, %v2050_v37  ;;  %v2049_v42 = vmul.f32 0.03125, %v2045_v38 }
 0xd0e   :  { %4652 = vrsqrt.f32 %v2052_v40  ;;  %v2051_v43 = vadd.f32 1e-05, %v2049_v42 }
 0xd0f   :  { %v2176_v44 = vpop.permute.xlu0 %2175 }
 0xd10   :  { %4654 = vrsqrt.f32 %v2051_v43  ;;  %4482 = vmatpush3.xpose.msk.msra.mxu1 %vm378_vm2, %v2176_v44 }
 0xd11   :  { %4486 = vmatprep.subr.mxu1 %v4696_v24 }
 0xd1b   :  { %v4653_v45 = vpop.eup %4652 }
 0xd1c   :  { %v2056_v47 = vmul.f32 %v4653_v45, %v2040_v23 }
 0xd1d   :  { %v4655_v48 = vpop.eup %4654 }
 0xd1e   :  { %v2055_v49 = vmul.f32 %v4655_v48, %v2039_v25  ;;  %v2065_v50 = vmul.f32 %v4161_v46, %v2056_v47 }
 0xd20   :  { %v2064_v54 = vmul.f32 %v4161_v46, %v2055_v49  ;;  %v5138_v55 = vadd.f32 %v4162_v52, %v2065_v50 }
 0xd22   :  { %v5140_v56 = vadd.f32 %v4162_v52, %v2064_v54  ;;  %v2076_v51 = vadd.f32 %v5138_v55, %v4905_v20 }
 0xd24   :  { %v2075_v57 = vadd.f32 %v5140_v56, %v4873_v10  ;;  %v2253_v10 = vpop.permute.xlu1 %2252 }
 0xd26   :  { %4478 = vmatprep.mubr.msk.f32.mxu0 %vm104_vm0, %v2075_v57 }
 0xd27   :  { %4479 = vmatmul.mubr.msk.f32.vlgmr.msra.gmra.mxu0 %vm104_vm0, %v2076_v51 }
 0xd28   :  { %4493 = vmatprep.mubr.msk.f32.mxu0 %vm4697_vm1, %v4696_v24 }
 0xde7   :  { %v4480_v53 = vpop.f32.mrf.mxu0 }
 0xde8   :  { %v2166_v61 = vadd.f32 %v4480_v53, %v4163_v58  ;;  %v2171_v53 = vld [vmem:[%s5404_s10] sm:$0xff] }
 0xde9   :  { %v2160_v59 = vpop.f32.mrf.mxu0 }
 0xdea   :  { %v2161_v60 = vadd.f32 %v4163_v58, %v2160_v59  ;;  %v5160_v20 = vmul.f32 0.35355338, %v2166_v61 }
 0xdec   :  { %v5153_v62 = vmul.f32 0.35355338, %v2161_v60 }
 0xdee   :  { %4484 = vmatmul.mubr.msk.f32.vlgmr.msra.gmra.mxu1 %vm378_vm2, %v5153_v62 }
 0xdef   :  { %4487 = vmatpush3.xpose.msk.msra.mxu1 %vm378_vm2, %v2253_v10  ;;  %4488 = vmatprep.mubr.msk.f32.mxu1 %vm4697_vm1, %v4696_v24 }
 0xdf0   :  { %4496 = vmatprep.subr.mxu1 %v4696_v24 }
 0xdf2   :  { %4489 = vmatmul.mubr.msk.f32.vlgmr.msra.gmra.mxu1 %vm378_vm2, %v5160_v20 }
 0xdf3   :  { %4498 = vmatprep.mubr.msk.f32.mxu1 %vm4697_vm1, %v4696_v24 }
 0xeae   :  { %v2248_v63 = vpop.f32.mrf.mxu1 }
 0xeaf   :  { %v2329_v0 = vsel %vm378_vm2, %v2248_v63, -inf }
 0xeb0   :  { %2330 = vmax.xlane.f32.xlu1 %v2329_v0  ;;  %v4485_v1 = vpop.f32.mrf.mxu1 }
 0xeb2   :  { %v2325_v2 = vpop.f32.mrf.mxu1 }
 0xeb3   :  { %v2332_v3 = vsel %vm378_vm2, %v2325_v2, -inf }
 0xeb4   :  { %2333 = vmax.xlane.f32.xlu0 %v2332_v3  ;;  %v4490_v34 = vpop.f32.mrf.mxu1 }
 0xeb5   :  { %v2172_v34 = vld [vmem:[%s5404_s10 + $0x8] sm:$0xff] }
 0xec1   :  { %2427 = vrot.lane.b32.xlu1 %v4959_v39, %s4701_s7 }
 0xec5   :  { %2505 = vrot.lane.b32.xlu1 %v4929_v29, %s4702_s9 }
 0xec9   :  { %2583 = vrot.lane.b32.xlu1 %v4927_v27, %s4702_s9 }
 0xf39   :  { %v2331_v4 = vpop.xlane.xlu1 %2330 }
 0xf3a   :  { %v2335_v5 = vsub.f32 %v2248_v63, %v2331_v4 }
 0xf3c   :  { %v2337_v6 = vmul.f32 1.442695, %v2335_v5 }
 0xf3d   :  { %v2334_v7 = vpop.xlane.xlu0 %2333  ;;  %v2428_v8 = vpop.permute.xlu1 %2427 }
 0xf3e   :  { %4656 = vpow2.f32 %v2337_v6  ;;  %v2336_v11 = vsub.f32 %v2325_v2, %v2334_v7  ;;  %4497 = vmatpush3.msra.mxu1 %v2428_v8 }
 0xf3f   :  { %4506 = vmatprep.subr.mxu1 %v4696_v24 }
 0xf40   :  { %v2339_v12 = vmul.f32 1.442695, %v2336_v11 }
 0xf41   :  { %v2506_v17 = vpop.permute.xlu1 %2505 }
 0xf42   :  { %4658 = vpow2.f32 %v2339_v12 }
 0xf45   :  { %v2584_v18 = vpop.permute.xlu1 %2583 }
 0xf4b   :  { %v4657_v13 = vpop.eup %4656 }
 0xf4c   :  { %v2341_v14 = vsel %vm378_vm2, %v4657_v13, 0.0 }
 0xf4d   :  { %2342 = vadd.xlane.f32.xlu0 %v2341_v14 }
 0xf4f   :  { %v4659_v15 = vpop.eup %4658 }
 0xf50   :  { %v2344_v16 = vsel %vm378_vm2, %v4659_v15, 0.0 }
 0xf51   :  { %2345 = vadd.xlane.f32.xlu1 %v2344_v16 }
 0xf62   :  { %2581 = vrot.lane.b32.xlu1 %v5160_v20, %s4698_s4 }
 0xf63   :  { %2351 = vrot.lane.b32.xlu0 %v4961_v41, %s4701_s7 }
 0xf67   :  { %2503 = vrot.lane.b32.xlu0 %v5153_v62, %s4698_s4  ;;  %s4703_s4 = smov 80  }
 0xfd6   :  { %v2343_v21 = vpop.xlane.xlu0 %2342 }
 0xfd7   :  { %4660 = vrcp.f32 %v2343_v21 }
 0xfda   :  { %v2352_v22 = vpop.permute.xlu0 %2351  ;;  %v2346_v23 = vpop.xlane.xlu1 %2345 }
 0xfdb   :  { %4662 = vrcp.f32 %v2346_v23  ;;  %4492 = vmatpush3.msra.mxu0 %v2352_v22 }
 0xfdc   :  { %4501 = vmatprep.subr.mxu0 %v4696_v24 }
 0xfde   :  { %v2504_v30 = vpop.permute.xlu0 %2503  ;;  %v2582_v19 = vpop.permute.xlu1 %2581 }
 0xfe4   :  { %v4661_v36 = vpop.eup %4660 }
 0xfe5   :  { %v2349_v25 = vmul.f32 %v4661_v36, %v4657_v13 }
 0xfe7   :  { %4494 = vmatmul.mubr.msk.f32.vlgmr.msra.gmra.mxu0 %vm378_vm2, %v2349_v25 }
 0xfe8   :  { %v4663_v26 = vpop.eup %4662  ;;  %4502 = vmatpush3.xpose.msk.msra.mxu0 %vm378_vm2, %v2506_v17  ;;  %4503 = vmatprep.mubr.msk.f32.mxu0 %vm4697_vm1, %v4696_v24 }
 0xfe9   :  { %v2350_v28 = vmul.f32 %v4663_v26, %v4659_v15  ;;  %4511 = vmatprep.subr.mxu0 %v4696_v24 }
 0xfeb   :  { %4499 = vmatmul.mubr.msk.f32.vlgmr.msra.gmra.mxu1 %vm378_vm2, %v2350_v28  ;;  %4504 = vmatmul.mubr.msk.f32.vlgmr.msra.gmra.mxu0 %vm378_vm2, %v2504_v30 }
 0xfec   :  { %4507 = vmatpush3.xpose.msk.msra.mxu1 %vm378_vm2, %v2584_v18  ;;  %4508 = vmatprep.mubr.msk.f32.mxu1 %vm4697_vm1, %v4696_v24 }
 0xfed   :  { %4516 = vmatprep.subr.mxu1 %v4696_v24  ;;  %4513 = vmatprep.mubr.msk.f32.mxu0 %vm4697_vm1, %v4696_v24 }
 0xfef   :  { %4509 = vmatmul.mubr.msk.f32.vlgmr.msra.gmra.mxu1 %vm378_vm2, %v2582_v19 }
 0xff0   :  { %4518 = vmatprep.mubr.msk.f32.mxu1 %vm4697_vm1, %v4696_v24 }
0x10a7   :  { %v2423_v9 = vpop.f32.mrf.mxu0 }
0x10a9   :  { %v4495_v31 = vpop.f32.mrf.mxu0 }
0x10ab   :  { %v2499_v32 = vpop.f32.mrf.mxu1  ;;  %v2577_v33 = vpop.f32.mrf.mxu0 }
0x10ac   :  { %v2659_v35 = vsel %vm378_vm2, %v2577_v33, -inf }
0x10ad   :  { %2660 = vmax.xlane.f32.xlu0 %v2659_v35  ;;  %v4500_v37 = vpop.f32.mrf.mxu1  ;;  %v4505_v38 = vpop.f32.mrf.mxu0 }
0x10af   :  { %v2655_v40 = vpop.f32.mrf.mxu1 }
0x10b0   :  { %v2662_v42 = vsel %vm378_vm2, %v2655_v40, -inf }
0x10b1   :  { %2663 = vmax.xlane.f32.xlu1 %v2662_v42  ;;  %v4510_v43 = vpop.f32.mrf.mxu1 }
0x10c2   :  { %2757 = vrot.lane.b32.xlu1 %v4959_v39, %s4702_s9 }
0x10c6   :  { %2997 = vrot.lane.b32.xlu1 %v4929_v29, %s4703_s4 }
0x10ca   :  { %3075 = vrot.lane.b32.xlu1 %v4927_v27, %s4703_s4 }
0x10ce   :  { %3073 = vrot.lane.b32.xlu1 %v5160_v20, %s4699_s27 }
0x1136   :  { %v2661_v44 = vpop.xlane.xlu0 %2660 }
0x1137   :  { %v2665_v45 = vsub.f32 %v2577_v33, %v2661_v44 }
0x1139   :  { %v2667_v46 = vmul.f32 1.442695, %v2665_v45 }
0x113a   :  { %v2664_v47 = vpop.xlane.xlu1 %2663 }
0x113b   :  { %4664 = vpow2.f32 %v2667_v46  ;;  %v2666_v48 = vsub.f32 %v2655_v40, %v2664_v47 }
0x113d   :  { %v2669_v49 = vmul.f32 1.442695, %v2666_v48 }
0x113e   :  { %v2758_v50 = vpop.permute.xlu1 %2757 }
0x113f   :  { %4666 = vpow2.f32 %v2669_v49  ;;  %4517 = vmatpush3.msra.mxu1 %v2758_v50 }
0x1140   :  { %4526 = vmatprep.subr.mxu1 %v2171_v53 }
0x1142   :  { %v2998_v63 = vpop.permute.xlu1 %2997 }
0x1146   :  { %v3076_v2 = vpop.permute.xlu1 %3075 }
0x1148   :  { %v4665_v52 = vpop.eup %4664 }
0x1149   :  { %v2671_v54 = vsel %vm378_vm2, %v4665_v52, 0.0 }
0x114a   :  { %2672 = vadd.xlane.f32.xlu0 %v2671_v54  ;;  %v3074_v3 = vpop.permute.xlu1 %3073 }
0x114c   :  { %v4667_v57 = vpop.eup %4666 }
0x114d   :  { %v2674_v51 = vsel %vm378_vm2, %v4667_v57, 0.0 }
0x114e   :  { %2675 = vadd.xlane.f32.xlu0 %v2674_v51 }
0x1164   :  { %2681 = vrot.lane.b32.xlu0 %v4961_v41, %s4702_s9 }
0x1168   :  { %2995 = vrot.lane.b32.xlu0 %v5153_v62, %s4699_s27 }
0x11d3   :  { %v2673_v58 = vpop.xlane.xlu0 %2672 }
0x11d4   :  { %4668 = vrcp.f32 %v2673_v58 }
0x11d7   :  { %v2676_v59 = vpop.xlane.xlu0 %2675 }
0x11d8   :  { %4670 = vrcp.f32 %v2676_v59 }
0x11db   :  { %v2682_v60 = vpop.permute.xlu0 %2681 }
0x11dc   :  { %4512 = vmatpush3.msra.mxu0 %v2682_v60 }
0x11dd   :  { %4521 = vmatprep.subr.mxu0 %v2172_v34 }
0x11df   :  { %v2996_v8 = vpop.permute.xlu0 %2995 }
0x11e1   :  { %v4669_v61 = vpop.eup %4668 }
0x11e2   :  { %v2679_v10 = vmul.f32 %v4669_v61, %v4665_v52 }
0x11e4   :  { %4514 = vmatmul.mubr.msk.f32.vlgmr.msra.gmra.mxu0 %vm378_vm2, %v2679_v10 }
0x11e5   :  { %v4671_v0 = vpop.eup %4670  ;;  %4522 = vmatpush3.msra.mxu0 %v2172_v34 }
0x11e6   :  { %v2680_v1 = vmul.f32 %v4671_v0, %v4667_v57  ;;  %4531 = vmatprep.subr.mxu0 %v4696_v24 }
0x11e8   :  { %4519 = vmatmul.mubr.msk.f32.vlgmr.msra.gmra.mxu1 %vm378_vm2, %v2680_v1 }
0x11e9   :  { %4528 = vmatprep.mubr.msk.f32.mxu1 %vm378_vm2, %v2423_v9  ;;  %4527 = vmatpush3.msra.mxu1 %v2171_v53 }
0x11ea   :  { %4536 = vmatprep.subr.mxu1 %v4696_v24 }
0x11ec   :  { %4529 = vmatmul.mubr.msk.f32.vlgmr.msra.gmra.mxu1 %vm378_vm2, %v2499_v32 }
0x11ed   :  { %4537 = vmatpush3.xpose.msk.msra.mxu1 %vm378_vm2, %v3076_v2  ;;  %4538 = vmatprep.mubr.msk.f32.mxu1 %vm4697_vm1, %v4696_v24 }
0x11ee   :  { %4546 = vmatprep.subr.mxu1 %v4696_v24 }
0x11f0   :  { %4539 = vmatmul.mubr.msk.f32.vlgmr.msra.gmra.mxu1 %vm378_vm2, %v3074_v3 }
0x11f1   :  { %4548 = vmatprep.mubr.msk.f32.mxu1 %vm4697_vm1, %v4696_v24 }
0x12a4   :  { %v2753_v4 = vpop.f32.mrf.mxu0 }
0x12a5   :  { %4523 = vmatprep.mubr.msk.f32.mxu0 %vm378_vm2, %v2753_v4 }
0x12a6   :  { %v4515_v5 = vpop.f32.mrf.mxu0 }
0x12a8   :  { %v2829_v6 = vpop.f32.mrf.mxu1 }
0x12a9   :  { %4524 = vmatmul.mubr.msk.f32.vlgmr.msra.gmra.mxu0 %vm378_vm2, %v2829_v6 }
0x12aa   :  { %4532 = vmatpush3.xpose.msk.msra.mxu0 %vm378_vm2, %v2998_v63  ;;  %v4520_v7 = vpop.f32.mrf.mxu1  ;;  %4533 = vmatprep.mubr.msk.f32.mxu0 %vm4697_vm1, %v4696_v24 }
0x12ab   :  { %4541 = vmatprep.subr.mxu0 %v4696_v24 }
0x12ac   :  { %v5242_v11 = vpop.f32.mrf.mxu1 }
0x12ad   :  { %4534 = vmatmul.mubr.msk.f32.vlgmr.msra.gmra.mxu0 %vm378_vm2, %v2996_v8 }
0x12ae   :  { %v5245_v12 = vpop.f32.mrf.mxu1  ;;  %4543 = vmatprep.mubr.msk.f32.mxu0 %vm4697_vm1, %v4696_v24 }
0x12b0   :  { %v3147_v13 = vpop.f32.mrf.mxu1 }
0x12b1   :  { %v3154_v14 = vsel %vm378_vm2, %v3147_v13, -inf }
0x12b2   :  { %3155 = vmax.xlane.f32.xlu1 %v3154_v14  ;;  %v4540_v15 = vpop.f32.mrf.mxu1 }
0x12c3   :  { %3249 = vrot.lane.b32.xlu1 %v4959_v39, %s4703_s4 }
0x12c7   :  { %3410 = vrot.lane.b32.xlu1 %v4929_v29, %s4704_s1 }
0x12cb   :  { %3488 = vrot.lane.b32.xlu1 %v4927_v27, %s4704_s1 }
0x12cf   :  { %3486 = vrot.lane.b32.xlu1 %v5160_v20, %s4700_s2 }
0x133b   :  { %v3156_v16 = vpop.xlane.xlu1 %3155 }
0x133c   :  { %v3158_v18 = vsub.f32 %v3147_v13, %v3156_v16 }
0x133e   :  { %v3161_v21 = vmul.f32 1.442695, %v3158_v18 }
0x133f   :  { %v3250_v17 = vpop.permute.xlu1 %3249 }
0x1340   :  { %4547 = vmatpush3.msra.mxu1 %v3250_v17  ;;  %4672 = vpow2.f32 %v3161_v21  ;;  %v2174_v17 = vld [vmem:[%s5404_s10 + $0x18] sm:$0xff] }
0x1341   :  { %4556 = vmatprep.subr.mxu1 %v4696_v24 }
0x1343   :  { %v3411_v35 = vpop.permute.xlu1 %3410 }
0x1347   :  { %v3489_v49 = vpop.permute.xlu1 %3488 }
0x134b   :  { %v3487_v54 = vpop.permute.xlu1 %3486 }
0x134d   :  { %v4673_v25 = vpop.eup %4672 }
0x134e   :  { %v3166_v20 = vsel %vm378_vm2, %v4673_v25, 0.0 }
0x1369   :  { %v5259_v22 = vpop.f32.mrf.mxu0 }
0x136a   :  { %v2992_v60 = vadd.f32 %v5242_v11, %v5259_v22 }
0x136b   :  { %v5261_v23 = vpop.f32.mrf.mxu0 }
0x136c   :  { %v2987_v10 = vadd.f32 %v5245_v12, %v5261_v23 }
0x136d   :  { %v3069_v36 = vpop.f32.mrf.mxu0 }
0x136e   :  { %v3151_v29 = vsel %vm378_vm2, %v3069_v36, -inf }
0x136f   :  { %3152 = vmax.xlane.f32.xlu0 %v3151_v29  ;;  %v4535_v27 = vpop.f32.mrf.mxu0 }
0x1373   :  { %3167 = vadd.xlane.f32.xlu0 %v3166_v20 }
0x13f8   :  { %v3153_v26 = vpop.xlane.xlu0 %3152 }
0x13f9   :  { %v3157_v28 = vsub.f32 %v3069_v36, %v3153_v26  ;;  %v4198_v36 = vld [vmem:[%s5405_s11] ss:$0 sm:$0xff] }
0x13fb   :  { %v3159_v30 = vmul.f32 1.442695, %v3157_v28 }
0x13fc   :  { %v3168_v19 = vpop.xlane.xlu0 %3167 }
0x13fd   :  { %4674 = vpow2.f32 %v3159_v30 }
0x13fe   :  { %4676 = vrcp.f32 %v3168_v19 }
0x140a   :  { %v4675_v9 = vpop.eup %4674 }
0x140b   :  { %v4677_v31 = vpop.eup %4676  ;;  %v3163_v32 = vsel %vm378_vm2, %v4675_v9, 0.0 }
0x140c   :  { %3164 = vadd.xlane.f32.xlu0 %v3163_v32  ;;  %v3172_v33 = vmul.f32 %v4677_v31, %v4673_v25 }
0x140e   :  { %4549 = vmatmul.mubr.msk.f32.vlgmr.msra.gmra.mxu1 %vm378_vm2, %v3172_v33 }
0x140f   :  { %4557 = vmatpush3.xpose.msk.msra.mxu1 %vm378_vm2, %v3411_v35  ;;  %4558 = vmatprep.mubr.msk.f32.mxu1 %vm4697_vm1, %v4696_v24 }
0x1410   :  { %4566 = vmatprep.subr.mxu1 %v4696_v24 }
0x1422   :  { %3173 = vrot.lane.b32.xlu0 %v4961_v41, %s4703_s4 }
0x1426   :  { %3408 = vrot.lane.b32.xlu0 %v5153_v62, %s4700_s2  ;;  %v2173_v62 = vld [vmem:[%s5404_s10 + $0x10] sm:$0xff] }
0x1495   :  { %v3165_v37 = vpop.xlane.xlu0 %3164 }
0x1496   :  { %4678 = vrcp.f32 %v3165_v37 }
0x1499   :  { %v3174_v38 = vpop.permute.xlu0 %3173 }
0x149a   :  { %4542 = vmatpush3.msra.mxu0 %v3174_v38 }
0x149b   :  { %4551 = vmatprep.subr.mxu0 %v2173_v62 }
0x149d   :  { %v3409_v40 = vpop.permute.xlu0 %3408 }
0x149e   :  { %4559 = vmatmul.mubr.msk.f32.vlgmr.msra.gmra.mxu1 %vm378_vm2, %v3409_v40 }
0x149f   :  { %4568 = vmatprep.mubr.msk.f32.mxu1 %vm4697_vm1, %v4696_v24 }
0x14a3   :  { %v4679_v42 = vpop.eup %4678 }
0x14a4   :  { %v3171_v43 = vmul.f32 %v4679_v42, %v4675_v9 }
0x14a6   :  { %4544 = vmatmul.mubr.msk.f32.vlgmr.msra.gmra.mxu0 %vm378_vm2, %v3171_v43 }
0x14a7   :  { %4552 = vmatpush3.msra.mxu0 %v2173_v62  ;;  %v3876_v62 = vld [vmem:[%s5406_s16] sm:$0xff] }
0x14a8   :  { %4561 = vmatprep.subr.mxu0 %v4696_v24 }
0x14ce   :  { %v3321_v44 = vpop.f32.mrf.mxu1 }
0x14d0   :  { %v4550_v45 = vpop.f32.mrf.mxu1 }
0x14d1   :  { %v3877_v45 = vld [vmem:[%s5406_s16 + $0x8] sm:$0xff] }
0x155e   :  { %v3482_v46 = vpop.f32.mrf.mxu1 }
0x155f   :  { %v3564_v47 = vsel %vm378_vm2, %v3482_v46, -inf }
0x1560   :  { %3565 = vmax.xlane.f32.xlu0 %v3564_v47  ;;  %v4560_v48 = vpop.f32.mrf.mxu1  ;;  %v3976_v47 = vld [vmem:[%s5407_s18 + $0x30] sm:$0xff] }
0x1561   :  { %v3975_v48 = vld [vmem:[%s5407_s18 + $0x28] sm:$0xff] }
0x1566   :  { %v3245_v50 = vpop.f32.mrf.mxu0 }
0x1567   :  { %4553 = vmatprep.mubr.msk.f32.mxu0 %vm378_vm2, %v3245_v50 }
0x1568   :  { %v4545_v52 = vpop.f32.mrf.mxu0  ;;  %4554 = vmatmul.mubr.msk.f32.vlgmr.msra.gmra.mxu0 %vm378_vm2, %v3321_v44  ;;  %v3878_v44 = vld [vmem:[%s5406_s16 + $0x10] sm:$0xff] }
0x1569   :  { %4562 = vmatpush3.xpose.msk.msra.mxu0 %vm378_vm2, %v3489_v49  ;;  %4563 = vmatprep.mubr.msk.f32.mxu0 %vm4697_vm1, %v4696_v24  ;;  %v3974_v49 = vld [vmem:[%s5407_s18 + $0x20] sm:$0xff] }
0x156a   :  { %4571 = vmatprep.subr.mxu0 %v4696_v24 }
0x156c   :  { %4564 = vmatmul.mubr.msk.f32.vlgmr.msra.gmra.mxu0 %vm378_vm2, %v3487_v54 }
0x156d   :  { %4573 = vmatprep.mubr.msk.f32.mxu0 %vm4697_vm1, %v4696_v24 }
0x15e9   :  { %v3566_v57 = vpop.xlane.xlu0 %3565 }
0x15ea   :  { %v3570_v51 = vsub.f32 %v3482_v46, %v3566_v57  ;;  %v3977_v46 = vld [vmem:[%s5407_s18 + $0x38] sm:$0xff] }
0x15ec   :  { %v3572_v53 = vmul.f32 1.442695, %v3570_v51 }
0x15ee   :  { %4680 = vpow2.f32 %v3572_v53 }
0x15fb   :  { %v4681_v58 = vpop.eup %4680 }
0x15fc   :  { %v3576_v59 = vsel %vm378_vm2, %v4681_v58, 0.0 }
0x15fd   :  { %3577 = vadd.xlane.f32.xlu0 %v3576_v59 }
0x1628   :  { %v4555_v61 = vpop.f32.mrf.mxu0 }
0x1629   :  { %v3407_v63 = vadd.f32 %v4555_v61, %v2992_v60  ;;  %v4199_v60 = vld [vmem:[%s5408_s22] ss:$0 sm:$0xff] }
0x162a   :  { %v3397_v0 = vpop.f32.mrf.mxu0 }
0x162b   :  { %v3406_v1 = vadd.f32 %v3397_v0, %v2987_v10 }
0x162c   :  { %v3560_v2 = vpop.f32.mrf.mxu0 }
0x162d   :  { %v3567_v24 = vsel %vm378_vm2, %v3560_v2, -inf }
0x162e   :  { %3568 = vmax.xlane.f32.xlu1 %v3567_v24  ;;  %v4565_v3 = vpop.f32.mrf.mxu0 }
0x162f   :  { %v3973_v3 = vld [vmem:[%s5407_s18 + $0x18] sm:$0xff] }
0x163f   :  { %3662 = vrot.lane.b32.xlu1 %v4959_v39, %s4704_s1 }
0x1686   :  { %v3578_v11 = vpop.xlane.xlu0 %3577 }
0x16b7   :  { %v3569_v34 = vpop.xlane.xlu1 %3568 }
0x16b8   :  { %v3571_v4 = vsub.f32 %v3560_v2, %v3569_v34  ;;  %v3972_v34 = vld [vmem:[%s5407_s18 + $0x10] sm:$0xff] }
0x16ba   :  { %v3574_v5 = vmul.f32 1.442695, %v3571_v4  ;;  %v3971_v4 = vld [vmem:[%s5407_s18 + $0x8] sm:$0xff] }
0x16bb   :  { %v3663_v6 = vpop.permute.xlu1 %3662 }
0x16bc   :  { %4682 = vpow2.f32 %v3574_v5  ;;  %4572 = vmatpush3.msra.mxu0 %v3663_v6  ;;  %v3970_v5 = vld [vmem:[%s5407_s18] sm:$0xff] }
0x16bd   :  { %4684 = vrcp.f32 %v3578_v11  ;;  %v4201_v6 = vld [vmem:[%s5410_s17] ss:$0 sm:$0xff] }
0x16c9   :  { %v4683_v7 = vpop.eup %4682 }
0x16ca   :  { %v3579_v8 = vsel %vm378_vm2, %v4683_v7, 0.0  ;;  %v4685_v13 = vpop.eup %4684 }
0x16cb   :  { %3580 = vadd.xlane.f32.xlu0 %v3579_v8  ;;  %v3584_v39 = vmul.f32 %v4685_v13, %v4681_v58 }
0x16e1   :  { %3586 = vrot.lane.b32.xlu0 %v4961_v41, %s4704_s1 }
0x1754   :  { %v3581_v12 = vpop.xlane.xlu0 %3580 }
0x1755   :  { %4686 = vrcp.f32 %v3581_v12 }
0x1758   :  { %v3587_v14 = vpop.permute.xlu0 %3586 }
0x1759   :  { %4567 = vmatpush3.msra.mxu1 %v3587_v14 }
0x175a   :  { %4569 = vmatmul.mubr.msk.f32.vlgmr.msra.gmra.mxu1 %vm378_vm2, %v3584_v39  ;;  %4576 = vmatprep.subr.mxu1 %v2174_v17  ;;  %v4204_v39 = vld [vmem:[%s5411_s19] ss:$0 sm:$0xff] }
0x175b   :  { %4577 = vmatpush3.msra.mxu1 %v2174_v17 }
0x175c   :  { %4592 = vmatprep.subr.mxu1 %v3977_v46 }
0x1762   :  { %v4687_v15 = vpop.eup %4686 }
0x1763   :  { %v3585_v16 = vmul.f32 %v4687_v15, %v4683_v7 }
0x1765   :  { %4574 = vmatmul.mubr.msk.f32.vlgmr.msra.gmra.mxu0 %vm378_vm2, %v3585_v16 }
0x181a   :  { %v3658_v41 = vpop.f32.mrf.mxu1 }
0x181b   :  { %4578 = vmatprep.mubr.msk.f32.mxu1 %vm378_vm2, %v3658_v41 }
0x181c   :  { %v4570_v18 = vpop.f32.mrf.mxu1 }
0x1825   :  { %v3734_v21 = vpop.f32.mrf.mxu0 }
0x1826   :  { %4579 = vmatmul.mubr.msk.f32.vlgmr.msra.gmra.mxu1 %vm378_vm2, %v3734_v21 }
0x1827   :  { %v4575_v22 = vpop.f32.mrf.mxu0  ;;  %4593 = vmatpush3.msra.mxu1 %v3977_v46 }
0x1828   :  { %4594 = vmatprep.subr.mxu1 %v3976_v47 }
0x1829   :  { %4595 = vmatpush3.msra.mxu1 %v3976_v47 }
0x182a   :  { %4596 = vmatprep.subr.mxu1 %v3975_v48 }
0x182b   :  { %4597 = vmatpush3.msra.mxu1 %v3975_v48 }
0x182c   :  { %4598 = vmatprep.subr.mxu1 %v3974_v49 }
0x182d   :  { %4599 = vmatpush3.msra.mxu1 %v3974_v49 }
0x182e   :  { %4600 = vmatprep.subr.mxu1 %v3973_v3 }
0x182f   :  { %4601 = vmatpush3.msra.mxu1 %v3973_v3 }
0x1830   :  { %4602 = vmatprep.subr.mxu1 %v3972_v34 }
0x1831   :  { %4603 = vmatpush3.msra.mxu1 %v3972_v34 }
0x1832   :  { %4604 = vmatprep.subr.mxu1 %v3971_v4 }
0x1833   :  { %4605 = vmatpush3.msra.mxu1 %v3971_v4 }
0x1834   :  { %4606 = vmatprep.subr.mxu1 %v3970_v5 }
0x1835   :  { %4607 = vmatpush3.msra.mxu1 %v3970_v5 }
0x18e6   :  { %v4580_v23 = vpop.f32.mrf.mxu1 }
0x18e7   :  { %v3820_v29 = vadd.f32 %v4580_v23, %v3407_v63 }
0x18e8   :  { %v3810_v25 = vpop.f32.mrf.mxu1 }
0x18e9   :  { %v3829_v27 = vadd.f32 %v4198_v36, %v3820_v29  ;;  %v3819_v20 = vadd.f32 %v3810_v25, %v3406_v1  ;;  %v4200_v1 = vld [vmem:[%s5409_s23] ss:$0 sm:$0xff] }
0x18eb   :  { %v3828_v26 = vadd.f32 %v4198_v36, %v3819_v20  ;;  %v3831_v28 = vadd.f32 %v3829_v27, %v5138_v55 }
0x18ed   :  { %v3835_v30 = vsel %vm104_vm0, %v3831_v28, 0.0  ;;  %v3830_v19 = vadd.f32 %v3828_v26, %v5140_v56  ;;  %v3879_v56 = vld [vmem:[%s5406_s16 + $0x18] sm:$0xff] }
0x18ee   :  { %3836 = vadd.xlane.f32.xlu0 %v3835_v30  ;;  %4581 = vmatprep.subr.mxu0 %v3879_v56 }
0x18ef   :  { %v3832_v9 = vsel %vm104_vm0, %v3830_v19, 0.0  ;;  %4582 = vmatpush3.msra.mxu0 %v3879_v56  ;;  %v4208_v56 = vld [vmem:[%s5413_s25] ss:$0 sm:$0xff] }
0x18f0   :  { %3833 = vadd.xlane.f32.xlu1 %v3832_v9  ;;  %4583 = vmatprep.subr.mxu0 %v3878_v44 }
0x18f1   :  { %4584 = vmatpush3.msra.mxu0 %v3878_v44 }
0x18f2   :  { %4585 = vmatprep.subr.mxu0 %v3877_v45 }
0x18f3   :  { %4586 = vmatpush3.msra.mxu0 %v3877_v45 }
0x18f4   :  { %4587 = vmatprep.subr.mxu0 %v3876_v62 }
0x18f5   :  { %4588 = vmatpush3.msra.mxu0 %v3876_v62 }
0x1977   :  { %v3837_v31 = vpop.xlane.xlu0 %3836 }
0x1978   :  { %v3839_v32 = vmul.f32 0.03125, %v3837_v31 }
0x1979   :  { %v3834_v33 = vpop.xlane.xlu1 %3833 }
0x197a   :  { %v3841_v35 = vsub.f32 %v3831_v28, %v3839_v32  ;;  %v3838_v37 = vmul.f32 0.03125, %v3834_v33 }
0x197c   :  { %v3840_v38 = vsub.f32 %v3830_v19, %v3838_v37  ;;  %v3843_v40 = vmul.f32 %v3841_v35, %v3841_v35 }
0x197e   :  { %v3847_v42 = vsel %vm104_vm0, %v3843_v40, 0.0  ;;  %v3842_v43 = vmul.f32 %v3840_v38, %v3840_v38 }
0x197f   :  { %3848 = vadd.xlane.f32.xlu1 %v3847_v42  ;;  %v4207_v42 = vld [vmem:[%s5412_s24] ss:$0 sm:$0xff] }
0x1980   :  { %v3844_v55 = vsel %vm104_vm0, %v3842_v43, 0.0 }
0x1981   :  { %3845 = vadd.xlane.f32.xlu0 %v3844_v55 }
0x1a08   :  { %v3849_v50 = vpop.xlane.xlu1 %3848 }
0x1a09   :  { %v3851_v52 = vmul.f32 0.03125, %v3849_v50 }
0x1a0a   :  { %v3846_v54 = vpop.xlane.xlu0 %3845 }
0x1a0b   :  { %v3853_v57 = vadd.f32 1e-05, %v3851_v52  ;;  %v3850_v51 = vmul.f32 0.03125, %v3846_v54 }
0x1a0d   :  { %4688 = vrsqrt.f32 %v3853_v57  ;;  %v3852_v53 = vadd.f32 1e-05, %v3850_v51 }
0x1a0f   :  { %4690 = vrsqrt.f32 %v3852_v53 }
0x1a1a   :  { %v4689_v58 = vpop.eup %4688 }
0x1a1b   :  { %v3857_v59 = vmul.f32 %v4689_v58, %v3841_v35 }
0x1a1c   :  { %v4691_v61 = vpop.eup %4690 }
0x1a1d   :  { %v3856_v10 = vmul.f32 %v4691_v61, %v3840_v38  ;;  %v3866_v63 = vmul.f32 %v4199_v60, %v3857_v59 }
0x1a1f   :  { %v3865_v0 = vmul.f32 %v4199_v60, %v3856_v10  ;;  %v3875_v24 = vadd.f32 %v4200_v1, %v3866_v63 }
0x1a21   :  { %v3874_v2 = vadd.f32 %v4200_v1, %v3865_v0 }
0x1a23   :  { %4589 = vmatprep.mubr.msk.f32.mxu0 %vm104_vm0, %v3874_v2 }
0x1a24   :  { %4590 = vmatmul.mubr.msk.f32.vlgmr.msra.gmra.mxu0 %vm104_vm0, %v3875_v24 }
0x1ae4   :  { %v4591_v7 = vpop.f32.mrf.mxu0 }
0x1ae5   :  { %v3965_v8 = vadd.f32 %v4591_v7, %v4201_v6 }
0x1ae6   :  { %v3959_v11 = vpop.f32.mrf.mxu0 }
0x1ae7   :  { %v3960_v12 = vadd.f32 %v4201_v6, %v3959_v11  ;;  %v3969_v14 = vmax.f32 %v3965_v8, 0.0 }
0x1ae9   :  { %v3968_v13 = vmax.f32 %v3960_v12, 0.0 }
0x1aeb   :  { %4608 = vmatprep.mubr.msk.f32.mxu1 %vm3985_vm3, %v3968_v13 }
0x1aec   :  { %4609 = vmatmul.mubr.msk.f32.vlgmr.msra.gmra.mxu1 %vm3985_vm3, %v3969_v14 }
0x1bac   :  { %v4610_v15 = vpop.f32.mrf.mxu1 }
0x1bad   :  { %v4064_v16 = vadd.f32 %v4610_v15, %v4204_v39 }
0x1bae   :  { %v4058_v17 = vpop.f32.mrf.mxu1 }
0x1baf   :  { %v4059_v41 = vadd.f32 %v4204_v39, %v4058_v17  ;;  %v4068_v18 = vadd.f32 %v4064_v16, %v3875_v24 }
0x1bb1   :  { %v4072_v21 = vsel %vm104_vm0, %v4068_v18, 0.0  ;;  %v4067_v22 = vadd.f32 %v4059_v41, %v3874_v2 }
0x1bb2   :  { %4073 = vadd.xlane.f32.xlu1 %v4072_v21 }
0x1bb3   :  { %v4069_v23 = vsel %vm104_vm0, %v4067_v22, 0.0 }
0x1bb4   :  { %4070 = vadd.xlane.f32.xlu0 %v4069_v23 }
0x1c3b   :  { %v4074_v36 = vpop.xlane.xlu1 %4073 }
0x1c3c   :  { %v4076_v29 = vmul.f32 0.03125, %v4074_v36 }
0x1c3d   :  { %v4071_v25 = vpop.xlane.xlu0 %4070 }
0x1c3e   :  { %v4078_v27 = vsub.f32 %v4068_v18, %v4076_v29  ;;  %v4075_v20 = vmul.f32 0.03125, %v4071_v25 }
0x1c40   :  { %v4077_v26 = vsub.f32 %v4067_v22, %v4075_v20  ;;  %v4080_v28 = vmul.f32 %v4078_v27, %v4078_v27 }
0x1c42   :  { %v4084_v30 = vsel %vm104_vm0, %v4080_v28, 0.0  ;;  %v4079_v19 = vmul.f32 %v4077_v26, %v4077_v26 }
0x1c43   :  { %4085 = vadd.xlane.f32.xlu1 %v4084_v30 }
0x1c44   :  { %v4081_v9 = vsel %vm104_vm0, %v4079_v19, 0.0 }
0x1c45   :  { %4082 = vadd.xlane.f32.xlu0 %v4081_v9 }
0x1ccc   :  { %v4086_v31 = vpop.xlane.xlu1 %4085 }
0x1ccd   :  { %v4088_v32 = vmul.f32 0.03125, %v4086_v31 }
0x1cce   :  { %v4083_v33 = vpop.xlane.xlu0 %4082 }
0x1ccf   :  { %v4090_v35 = vadd.f32 1e-05, %v4088_v32  ;;  %v4087_v37 = vmul.f32 0.03125, %v4083_v33 }
0x1cd1   :  { %4692 = vrsqrt.f32 %v4090_v35  ;;  %v4089_v38 = vadd.f32 1e-05, %v4087_v37 }
0x1cd3   :  { %4694 = vrsqrt.f32 %v4089_v38 }
0x1cde   :  { %v4693_v40 = vpop.eup %4692 }
0x1cdf   :  { %v4094_v43 = vmul.f32 %v4693_v40, %v4078_v27 }
0x1ce0   :  { %v4695_v55 = vpop.eup %4694 }
0x1ce1   :  { %v4103_v44 = vmul.f32 %v4207_v42, %v4094_v43  ;;  %v4093_v45 = vmul.f32 %v4695_v55, %v4077_v26 }
0x1ce3   :  { %v4112_v62 = vadd.f32 %v4208_v56, %v4103_v44  ;;  %v4102_v46 = vmul.f32 %v4207_v42, %v4093_v45 }
0x1ce5   :  { %4114 = vst.msk [vmem:[%s5414_s26 + $0x8] sm:$0xff] %vm104_vm0, %v4112_v62  ;;  %v4111_v47 = vadd.f32 %v4208_v56, %v4102_v46 }
0x1ce7   :  { %4113 = vst.msk [vmem:[%s5414_s26] sm:$0xff] %vm104_vm0, %v4111_v47 }

</bundles_post_ra>
